<compile_context>
chip_gen: v7x
topology: tpu7x:2x2x1
jax: 0.10.0
libtpu: 0.0.40
codegen_flags: <defaults>
</compile_context>

<pallas_src>
import math

import jax
import jax.numpy as jnp
import numpy as np
from jax import lax
from jax.experimental import pallas as pl
from jax.experimental.pallas import tpu as pltpu

EPS = 1e-5
LANE = 128


def _round_up(x, m):
    return (x + m - 1) // m * m


# ---------------------------------------------------------------------------
# Fused dense-layer kernel:
#   BN1(eval) + ReLU + 1x1 conv   (accumulated over K blocks of input channels)
#   -> BN2(eval) + ReLU + 3x3 SAME conv (3-tap row im2col, 3 MXU matmuls)
#   -> new `growth` channels merged in place into the aliased feature buffer
# ---------------------------------------------------------------------------
def _fused_dense_layer(feat, p, *, h, w, cin, growth):
    """feat: (N, H*W, Cpad) bf16 feature buffer (aliased as the output).

    p holds lane-padded parameters (see prepare_params):
       scale1/shift1: (1, cov) f32      w1: (cov, Cm)       bf16
       scale2/shift2: (1, Cm)  f32      w2: (3, 3*Cm, 128)  bf16
    Returns the updated feature buffer (same shape/dtype, buffer-aliased).
    """
    n, hw_total, c_pad = feat.shape
    hw = h * w
    assert hw_total == hw
    cov, cm = p["w1"].shape          # covered (streamed) input channels, padded Cm
    co = p["w2"].shape[-1]
    assert co == LANE
    off = cin % LANE                 # lane offset of the new channels in their block
    assert off + growth <= LANE, "new channels must not span a 128-lane block"
    new_blk = cin // LANE            # 128-lane block that receives the new channels

    # K-reduction block: 256 when the coverage allows (v6e/v7x MXU depth), else 128.
    kblk = 256 if (cov % 256 == 0) else 128
    nk = cov // kblk
    new_k = (new_blk * LANE) // kblk      # K step whose input block holds new_blk
    half = new_blk * LANE - new_k * kblk  # lane offset of new_blk inside that block
    last_k = nk - 1

    def kernel(x_ref, s1_ref, b1_ref, w1_ref, s2_ref, b2_ref, w2_ref,
               o_ref, bt_ref, keep_ref, col_ref):
        k = pl.program_id(1)

        # ---- BN1 + ReLU + 1x1 conv, accumulated over kblk-channel blocks ----
        @pl.when(k == 0)
        def _():
            bt_ref[...] = jnp.zeros_like(bt_ref)

        x = x_ref[...].astype(jnp.float32)                    # (hw, kblk)
        a = jnp.maximum(x * s1_ref[...] + b1_ref[...], 0.0)   # f32 BN+ReLU (v5e-safe)
        bt_ref[...] += jnp.dot(a.astype(jnp.bfloat16), w1_ref[...],
                               preferred_element_type=jnp.float32)

        # Snapshot the existing content of the 128-lane block that will receive
        # the new channels, so the epilogue can merge without an HBM round trip.
        @pl.when(k == new_k)
        def _():
            keep_ref[...] = x_ref[:, half:half + LANE]

        # ---- BN2 + ReLU + 3x3 SAME conv + in-place channel writeback ----
        @pl.when(k == last_k)
        def _():
            bact = jnp.maximum(bt_ref[...] * s2_ref[...] + b2_ref[...], 0.0)
            bact = bact.astype(jnp.bfloat16)                  # (hw, cm)

            # Column-boundary masks on the flattened spatial rows (source side).
            xi = lax.broadcasted_iota(jnp.int32, (hw, cm), 0) % w
            z = jnp.zeros_like(bact)
            bact_l = jnp.where(xi != w - 1, bact, z)   # left tap never reads col w-1
            bact_r = jnp.where(xi != 0, bact, z)       # right tap never reads col 0

            # 3-tap row im2col: col[r*w + x, t*cm + c] = act_pad[r, x + t, c] with
            # r in [0, h+2) padded rows and t the kw tap.  Only the padding rows
            # (w+1 at top, w+1 at bottom) are zeroed; the interior is overwritten
            # every epilogue so the persistent scratch stays megacore-safe.
            zrow = jnp.zeros((w + 1, 3 * cm), jnp.bfloat16)
            col_ref[0:w + 1, :] = zrow
            col_ref[(h + 1) * w - 1:(h + 2) * w, :] = zrow
            col_ref[w + 1:w + 1 + hw, 0 * cm:1 * cm] = bact_l
            col_ref[w + 0:w + 0 + hw, 1 * cm:2 * cm] = bact
            col_ref[w - 1:w - 1 + hw, 2 * cm:3 * cm] = bact_r

            # 3 accumulated MXU matmuls (K = 3*cm); the kh tap is a row offset
            # of dh*w into the flattened, row-padded col buffer.
            y = jnp.dot(col_ref[0 * w:0 * w + hw, :], w2_ref[0],
                        preferred_element_type=jnp.float32)
            y = y + jnp.dot(col_ref[1 * w:1 * w + hw, :], w2_ref[1],
                            preferred_element_type=jnp.float32)
            y = y + jnp.dot(col_ref[2 * w:2 * w + hw, :], w2_ref[2],
                            preferred_element_type=jnp.float32)

            # w2's output columns are zero outside [off, off+growth) and keep_ref
            # is exactly zero inside it (never written before), so a plain add
            # merges the new channels into the live 128-lane feature block.
            o_ref[...] = (keep_ref[...].astype(jnp.float32) + y).astype(jnp.bfloat16)

    flops = n * (2 * hw * cov * cm + 3 * 2 * hw * (3 * cm) * co)
    bytes_accessed = (n * (hw * cov * 2 + 2 * hw * LANE * 2)
                      + (cov * cm + 9 * cm * co) * 2 + (cov + 2 * cm) * 4)
    cost = pl.CostEstimate(flops=flops, transcendentals=0,
                           bytes_accessed=bytes_accessed)

    return pl.pallas_call(
        kernel,
        out_shape=jax.ShapeDtypeStruct(feat.shape, feat.dtype),
        grid_spec=pltpu.PrefetchScalarGridSpec(
            num_scalar_prefetch=0,
            grid=(n, nk),                     # reduction axis innermost
            in_specs=[
                pl.BlockSpec((None, hw, kblk), lambda b, k: (b, 0, k)),
                pl.BlockSpec((1, kblk), lambda b, k: (0, k)),
                pl.BlockSpec((1, kblk), lambda b, k: (0, k)),
                pl.BlockSpec((kblk, cm), lambda b, k: (k, 0)),
                pl.BlockSpec((1, cm), lambda b, k: (0, 0)),
                pl.BlockSpec((1, cm), lambda b, k: (0, 0)),
                pl.BlockSpec((3, 3 * cm, co), lambda b, k: (0, 0, 0)),
            ],
            out_specs=pl.BlockSpec((None, hw, LANE),
                                   lambda b, k: (b, 0, new_blk)),
            scratch_shapes=[
                pltpu.VMEM((hw, cm), jnp.float32),                 # bottleneck acc
                pltpu.VMEM((hw, LANE), jnp.bfloat16),              # live-block snapshot
                pltpu.VMEM(((h + 2) * w, 3 * cm), jnp.bfloat16),   # 3-tap im2col
            ],
        ),
        input_output_aliases={0: 0},          # feat is updated in place
        compiler_params=pltpu.CompilerParams(
            dimension_semantics=("parallel", "arbitrary")),
        cost_estimate=cost,
    )(feat, p["scale1"], p["shift1"], p["w1"],
      p["scale2"], p["shift2"], p["w2"])


# ---------------------------------------------------------------------------
# DenseBlock orchestration: single bf16 lane-padded feature buffer, no concat,
# no wrapper-side writeback (the kernel aliases/updates the buffer itself).
# ---------------------------------------------------------------------------
def dense_block_forward(x_nchw, params, growth_rate):
    """Mirror of _DenseBlock.forward (eval mode).  x_nchw: (N, C0, H, W) f32."""
    n, c0, h, w = x_nchw.shape
    c_total = c0 + len(params) * growth_rate
    c_pad = _round_up(c_total, LANE)
    # Flattened, lane-padded bf16 feature buffer.  Unwritten channels are exact
    # zeros, so zero-padded per-layer params never see garbage.
    x_nhwc = jnp.transpose(x_nchw, (0, 2, 3, 1)).astype(jnp.bfloat16)
    feat = jnp.zeros((n, h * w, c_pad), jnp.bfloat16)
    feat = feat.at[:, :, :c0].set(x_nhwc.reshape(n, h * w, c0))
    cin = c0
    for p in params:
        feat = _fused_dense_layer(feat, p, h=h, w=w, cin=cin, growth=growth_rate)
        cin += growth_rate
    out = feat[:, :, :c_total].astype(jnp.float32).reshape(n, h, w, c_total)
    return jnp.transpose(out, (0, 3, 1, 2))                   # back to NCHW


# ---------------------------------------------------------------------------
# Parameter preparation: pad to lane-aligned shapes, cast weights to bf16.
# w2's real output channels are parked at lane offset (cin % 128) so the kernel
# epilogue's add-merge drops them straight into the aliased feature block.
# ---------------------------------------------------------------------------
def prepare_params(raw_params, growth_rate):
    prepared = []
    for p in raw_params:
        cin, cmid = p["w1"].shape
        cout = p["w2"].shape[-1]
        assert cout == growth_rate
        cov = _round_up(cin + growth_rate, LANE)   # channel coverage streamed by K
        cm = _round_up(cmid, LANE)
        off = cin % LANE
        scale1 = jnp.zeros((1, cov), jnp.float32).at[0, :cin].set(p["scale1"])
        shift1 = jnp.zeros((1, cov), jnp.float32).at[0, :cin].set(p["shift1"])
        w1 = (jnp.zeros((cov, cm), jnp.float32)
              .at[:cin, :cmid].set(p["w1"]).astype(jnp.bfloat16))
        scale2 = jnp.zeros((1, cm), jnp.float32).at[0, :cmid].set(p["scale2"])
        shift2 = jnp.zeros((1, cm), jnp.float32).at[0, :cmid].set(p["shift2"])
        # (kh, kw, cin, cout) -> (kh, kw*cm, 128): kw-major rows match the 3-tap
        # col layout; output channels sit at lane offset `off`.
        w2 = (jnp.zeros((3, 3, cm, LANE), jnp.float32)
              .at[:, :, :cmid, off:off + growth_rate].set(p["w2"])
              .reshape(3, 3 * cm, LANE).astype(jnp.bfloat16))
        prepared.append(dict(scale1=scale1, shift1=shift1, w1=w1,
                             scale2=scale2, shift2=shift2, w2=w2))
    return prepared


# ---------------------------------------------------------------------------
# Deterministic raw parameter init (folded eval-mode BN + conv weights)
# ---------------------------------------------------------------------------
def init_params(key, num_layers, num_input_features, bn_size, growth_rate):
    params = []
    for i in range(num_layers):
        cin = num_input_features + i * growth_rate
        cmid = bn_size * growth_rate
        cout = growth_rate
        ks = jax.random.split(jax.random.fold_in(key, i), 10)
        g1 = 1.0 + 0.1 * jax.random.normal(ks[0], (cin,), jnp.float32)
        b1 = 0.1 * jax.random.normal(ks[1], (cin,), jnp.float32)
        m1 = 0.1 * jax.random.normal(ks[2], (cin,), jnp.float32)
        v1 = 1.0 + 0.1 * jnp.abs(jax.random.normal(ks[3], (cin,), jnp.float32))
        scale1 = g1 / jnp.sqrt(v1 + EPS)
        shift1 = b1 - m1 * scale1
        # conv1 weight: PyTorch (cmid, cin, 1, 1) -> (cin, cmid)
        w1 = jax.random.normal(ks[4], (cin, cmid), jnp.float32) / math.sqrt(cin)
        g2 = 1.0 + 0.1 * jax.random.normal(ks[5], (cmid,), jnp.float32)
        b2 = 0.1 * jax.random.normal(ks[6], (cmid,), jnp.float32)
        m2 = 0.1 * jax.random.normal(ks[7], (cmid,), jnp.float32)
        v2 = 1.0 + 0.1 * jnp.abs(jax.random.normal(ks[8], (cmid,), jnp.float32))
        scale2 = g2 / jnp.sqrt(v2 + EPS)
        shift2 = b2 - m2 * scale2
        # conv2 weight: PyTorch (cout, cmid, 3, 3) -> (3, 3, cmid, cout)
        w2 = jax.random.normal(ks[9], (3, 3, cmid, cout), jnp.float32) / math.sqrt(9 * cmid)
        params.append(dict(scale1=scale1, shift1=shift1, w1=w1,
                           scale2=scale2, shift2=shift2, w2=w2))
    return params


# ---------------------------------------------------------------------------
# Pure-JAX reference (NCHW, like PyTorch).  Mirrors the kernel's intentional
# precision choices: bf16 feature storage between layers and bf16 MXU conv
# operands with f32 accumulation; BN/ReLU math in f32.
# ---------------------------------------------------------------------------
def _ref_forward(x_nchw, params):
    feats = [x_nchw.astype(jnp.bfloat16).astype(jnp.float32)]
    for p in params:
        cat = jnp.concatenate(feats, axis=1)
        a = jnp.maximum(cat * p["scale1"][None, :, None, None]
                        + p["shift1"][None, :, None, None], 0.0)
        w1 = jnp.transpose(p["w1"])[:, :, None, None]            # OIHW
        b = lax.conv_general_dilated(
            a.astype(jnp.bfloat16), w1.astype(jnp.bfloat16), (1, 1), "VALID",
            dimension_numbers=("NCHW", "OIHW", "NCHW"),
            preferred_element_type=jnp.float32)
        a2 = jnp.maximum(b * p["scale2"][None, :, None, None]
                         + p["shift2"][None, :, None, None], 0.0)
        w2 = jnp.transpose(p["w2"], (3, 2, 0, 1))                # OIHW
        new = lax.conv_general_dilated(
            a2.astype(jnp.bfloat16), w2.astype(jnp.bfloat16), (1, 1), "SAME",
            dimension_numbers=("NCHW", "OIHW", "NCHW"),
            preferred_element_type=jnp.float32)
        feats.append(new.astype(jnp.bfloat16).astype(jnp.float32))
    return jnp.concatenate(feats, axis=1)


if __name__ == "__main__":
    key = jax.random.PRNGKey(0)
    # Small shapes consistent with the module.
    N, C0, H, W = 2, 8, 16, 16
    num_layers, bn_size, growth_rate = 2, 2, 4

    x = jax.random.normal(jax.random.fold_in(key, 123), (N, C0, H, W), jnp.float32)
    raw_params = init_params(jax.random.fold_in(key, 7),
                             num_layers, C0, bn_size, growth_rate)
    prepared = prepare_params(raw_params, growth_rate)

    fwd = jax.jit(dense_block_forward, static_argnums=2)
    out = jax.block_until_ready(fwd(x, prepared, growth_rate))

    expected_c = C0 + num_layers * growth_rate
    assert out.shape == (N, expected_c, H, W), out.shape

    ref = jax.block_until_ready(_ref_forward(x, raw_params))
    # bf16 feature storage + bf16 MXU operands (f32 accumulate) in both kernel and
    # reference; remaining differences are accumulation-order effects only.
    np.testing.assert_allclose(np.asarray(out), np.asarray(ref),
                               rtol=1e-2, atol=1e-2)

    print("KERNEL_OK")
</pallas_src>

<mosaic_0001>
module attributes {stable_mosaic.version = 11 : i64} {
  func.func @kernel(%arg0: i32, %arg1: i32, %arg2: memref<1x256x128xbf16, #tpu.memory_space<vmem>>, %arg3: memref<1x128xf32, #tpu.memory_space<vmem>>, %arg4: memref<1x128xf32, #tpu.memory_space<vmem>>, %arg5: memref<128x128xbf16, #tpu.memory_space<vmem>>, %arg6: memref<1x128xf32, #tpu.memory_space<vmem>>, %arg7: memref<1x128xf32, #tpu.memory_space<vmem>>, %arg8: memref<3x384x128xbf16, #tpu.memory_space<vmem>>, %arg9: memref<1x256x128xbf16, #tpu.memory_space<vmem>>, %arg10: memref<256x128xf32, #tpu.memory_space<vmem>>, %arg11: memref<256x128xbf16, #tpu.memory_space<vmem>>, %arg12: memref<288x384xbf16, #tpu.memory_space<vmem>>) attributes {dimension_semantics = [#tpu.dimension_semantics<parallel>, #tpu.dimension_semantics<arbitrary>], iteration_bounds = array<i64: 2, 1>, scalar_prefetch = 0 : i64, scratch_operands = 3 : i64, tpu.core_type = #tpu.core_type<tc>, window_params = [{transform_indices = @transform_0, window_bounds = array<i64: 1, 256, 128>}, {transform_indices = @transform_1, window_bounds = array<i64: 1, 128>}, {transform_indices = @transform_2, window_bounds = array<i64: 1, 128>}, {transform_indices = @transform_3, window_bounds = array<i64: 128, 128>}, {pipeline_mode = #tpu.pipeline_mode<synchronous>, transform_indices = @transform_4, window_bounds = array<i64: 1, 128>}, {pipeline_mode = #tpu.pipeline_mode<synchronous>, transform_indices = @transform_5, window_bounds = array<i64: 1, 128>}, {pipeline_mode = #tpu.pipeline_mode<synchronous>, transform_indices = @transform_6, window_bounds = array<i64: 3, 384, 128>}, {transform_indices = @transform_7, window_bounds = array<i64: 1, 256, 128>}]} {
    %c0_i32 = arith.constant 0 : i32
    %0 = arith.cmpi eq, %arg1, %c0_i32 : i32
    %1 = arith.extui %0 : i1 to i32
    %c0_i32_0 = arith.constant 0 : i32
    %2 = arith.cmpi ne, %1, %c0_i32_0 : i32
    scf.if %2 {
      %cst_18 = arith.constant 0.000000e+00 : f32
      %26 = vector.broadcast %cst_18 : f32 to vector<256x128xf32>
      %c0_19 = arith.constant 0 : index
      %c0_20 = arith.constant 0 : index
      %27 = vector.load %arg10[%c0_19, %c0_20] : memref<256x128xf32, #tpu.memory_space<vmem>>, vector<256x128xf32>
      tpu.vector_store %arg10[%c0_19, %c0_20], %26 {strides = array<i32>} : memref<256x128xf32, #tpu.memory_space<vmem>>, vector<256x128xf32>,
    } else {
    }
    %c0 = arith.constant 0 : index
    %c0_1 = arith.constant 0 : index
    %c0_2 = arith.constant 0 : index
    %3 = vector.load %arg2[%c0, %c0_1, %c0_2] : memref<1x256x128xbf16, #tpu.memory_space<vmem>>, vector<1x256x128xbf16>
    %4 = vector.shape_cast %3 : vector<1x256x128xbf16> to vector<256x128xbf16>
    %5 = arith.extf %4 : vector<256x128xbf16> to vector<256x128xf32>
    %c0_3 = arith.constant 0 : index
    %c0_4 = arith.constant 0 : index
    %6 = vector.load %arg3[%c0_3, %c0_4] : memref<1x128xf32, #tpu.memory_space<vmem>>, vector<1x128xf32>
    %7 = vector.broadcast %6 : vector<1x128xf32> to vector<256x128xf32>
    %8 = arith.mulf %5, %7 : vector<256x128xf32>
    %c0_5 = arith.constant 0 : index
    %c0_6 = arith.constant 0 : index
    %9 = vector.load %arg4[%c0_5, %c0_6] : memref<1x128xf32, #tpu.memory_space<vmem>>, vector<1x128xf32>
    %10 = vector.broadcast %9 : vector<1x128xf32> to vector<256x128xf32>
    %11 = arith.addf %8, %10 : vector<256x128xf32>
    %cst = arith.constant 0.000000e+00 : f32
    %12 = vector.broadcast %cst : f32 to vector<256x128xf32>
    %13 = arith.maximumf %11, %12 : vector<256x128xf32>
    %c0_7 = arith.constant 0 : index
    %c0_8 = arith.constant 0 : index
    %14 = vector.load %arg10[%c0_7, %c0_8] : memref<256x128xf32, #tpu.memory_space<vmem>>, vector<256x128xf32>
    %15 = arith.truncf %13 : vector<256x128xf32> to vector<256x128xbf16>
    %c0_9 = arith.constant 0 : index
    %c0_10 = arith.constant 0 : index
    %16 = vector.load %arg5[%c0_9, %c0_10] : memref<128x128xbf16, #tpu.memory_space<vmem>>, vector<128x128xbf16>
    %cst_11 = arith.constant dense<0.000000e+00> : vector<256x128xf32>
    %17 = tpu.matmul %15, %16, %cst_11 {dimension_numbers = #tpu.dot_dimension_numbers<[1], [0], [0], [1], [0, 0, 1, 1], [], []>} : vector<256x128xbf16>, vector<128x128xbf16>, vector<256x128xf32> -> vector<256x128xf32>
    %18 = arith.addf %14, %17 : vector<256x128xf32>
    %c0_12 = arith.constant 0 : index
    %c0_13 = arith.constant 0 : index
    %19 = vector.load %arg10[%c0_12, %c0_13] : memref<256x128xf32, #tpu.memory_space<vmem>>, vector<256x128xf32>
    tpu.vector_store %arg10[%c0_12, %c0_13], %18 {strides = array<i32>} : memref<256x128xf32, #tpu.memory_space<vmem>>, vector<256x128xf32>,
    %c0_i32_14 = arith.constant 0 : i32
    %20 = arith.cmpi eq, %arg1, %c0_i32_14 : i32
    %21 = arith.extui %20 : i1 to i32
    %c0_i32_15 = arith.constant 0 : i32
    %22 = arith.cmpi ne, %21, %c0_i32_15 : i32
    scf.if %22 {
      %c0_18 = arith.constant 0 : index
      %c0_19 = arith.constant 0 : index
      %c0_20 = arith.constant 0 : index
      %26 = vector.load %arg2[%c0_18, %c0_19, %c0_20] : memref<1x256x128xbf16, #tpu.memory_space<vmem>>, vector<1x256x128xbf16>
      %27 = vector.shape_cast %26 : vector<1x256x128xbf16> to vector<256x128xbf16>
      %c0_21 = arith.constant 0 : index
      %c0_22 = arith.constant 0 : index
      %28 = vector.load %arg11[%c0_21, %c0_22] : memref<256x128xbf16, #tpu.memory_space<vmem>>, vector<256x128xbf16>
      tpu.vector_store %arg11[%c0_21, %c0_22], %27 {strides = array<i32>} : memref<256x128xbf16, #tpu.memory_space<vmem>>, vector<256x128xbf16>,
    } else {
    }
    %c0_i32_16 = arith.constant 0 : i32
    %23 = arith.cmpi eq, %arg1, %c0_i32_16 : i32
    %24 = arith.extui %23 : i1 to i32
    %c0_i32_17 = arith.constant 0 : i32
    %25 = arith.cmpi ne, %24, %c0_i32_17 : i32
    scf.if %25 {
      %c0_18 = arith.constant 0 : index
      %c0_19 = arith.constant 0 : index
      %26 = vector.load %arg10[%c0_18, %c0_19] : memref<256x128xf32, #tpu.memory_space<vmem>>, vector<256x128xf32>
      %c0_20 = arith.constant 0 : index
      %c0_21 = arith.constant 0 : index
      %27 = vector.load %arg6[%c0_20, %c0_21] : memref<1x128xf32, #tpu.memory_space<vmem>>, vector<1x128xf32>
      %28 = vector.broadcast %27 : vector<1x128xf32> to vector<256x128xf32>
      %29 = arith.mulf %26, %28 : vector<256x128xf32>
      %c0_22 = arith.constant 0 : index
      %c0_23 = arith.constant 0 : index
      %30 = vector.load %arg7[%c0_22, %c0_23] : memref<1x128xf32, #tpu.memory_space<vmem>>, vector<1x128xf32>
      %31 = vector.broadcast %30 : vector<1x128xf32> to vector<256x128xf32>
      %32 = arith.addf %29, %31 : vector<256x128xf32>
      %cst_24 = arith.constant 0.000000e+00 : f32
      %33 = vector.broadcast %cst_24 : f32 to vector<256x128xf32>
      %34 = arith.maximumf %32, %33 : vector<256x128xf32>
      %35 = arith.truncf %34 : vector<256x128xf32> to vector<256x128xbf16>
      %36 = tpu.iota {dimensions = array<i32: 0>} : vector<256x128xi32>
      %c16_i32 = arith.constant 16 : i32
      %c0_i32_25 = arith.constant 0 : i32
      %37 = arith.cmpi eq, %c16_i32, %c0_i32_25 : i32
      %c1_i32 = arith.constant 1 : i32
      %38 = arith.select %37, %c1_i32, %c16_i32 : i32
      %39 = vector.broadcast %38 : i32 to vector<256x128xi32>
      %40 = arith.remsi %36, %39 : vector<256x128xi32>
      %c0_i32_26 = arith.constant 0 : i32
      %41 = vector.broadcast %c0_i32_26 : i32 to vector<256x128xi32>
      %42 = arith.cmpi ne, %40, %41 : vector<256x128xi32>
      %c0_i32_27 = arith.constant 0 : i32
      %43 = vector.broadcast %c0_i32_27 : i32 to vector<256x128xi32>
      %44 = arith.cmpi slt, %40, %43 : vector<256x128xi32>
      %c0_i32_28 = arith.constant 0 : i32
      %45 = arith.cmpi slt, %38, %c0_i32_28 : i32
      %46 = vector.broadcast %45 : i1 to vector<256x128xi1>
      %47 = vector.broadcast %46 : vector<256x128xi1> to vector<256x128xi1>
      %48 = arith.xori %44, %47 : vector<256x128xi1>
      %49 = arith.andi %48, %42 : vector<256x128xi1>
      %50 = vector.broadcast %38 : i32 to vector<256x128xi32>
      %51 = arith.addi %40, %50 : vector<256x128xi32>
      %52 = arith.select %49, %51, %40 : vector<256x128xi1>, vector<256x128xi32>
      %cst_29 = arith.constant 0.000000e+00 : bf16
      %53 = vector.broadcast %cst_29 : bf16 to vector<256x128xbf16>
      %c15_i32 = arith.constant 15 : i32
      %54 = vector.broadcast %c15_i32 : i32 to vector<256x128xi32>
      %55 = arith.cmpi ne, %52, %54 : vector<256x128xi32>
      %56 = arith.select %55, %35, %53 : vector<256x128xi1>, vector<256x128xbf16>
      %c0_i32_30 = arith.constant 0 : i32
      %57 = vector.broadcast %c0_i32_30 : i32 to vector<256x128xi32>
      %58 = arith.cmpi ne, %52, %57 : vector<256x128xi32>
      %59 = arith.select %58, %35, %53 : vector<256x128xi1>, vector<256x128xbf16>
      %cst_31 = arith.constant 0.000000e+00 : bf16
      %60 = vector.broadcast %cst_31 : bf16 to vector<17x384xbf16>
      %c0_32 = arith.constant 0 : index
      %c0_33 = arith.constant 0 : index
      %61 = vector.load %arg12[%c0_32, %c0_33] : memref<288x384xbf16, #tpu.memory_space<vmem>>, vector<17x384xbf16>
      tpu.vector_store %arg12[%c0_32, %c0_33], %60 {strides = array<i32>} : memref<288x384xbf16, #tpu.memory_space<vmem>>, vector<17x384xbf16>,
      %c271 = arith.constant 271 : index
      %c0_34 = arith.constant 0 : index
      %62 = vector.load %arg12[%c271, %c0_34] : memref<288x384xbf16, #tpu.memory_space<vmem>>, vector<17x384xbf16>
      tpu.vector_store %arg12[%c271, %c0_34], %60 {strides = array<i32>} : memref<288x384xbf16, #tpu.memory_space<vmem>>, vector<17x384xbf16>,
      %c17 = arith.constant 17 : index
      %c0_35 = arith.constant 0 : index
      %63 = vector.load %arg12[%c17, %c0_35] : memref<288x384xbf16, #tpu.memory_space<vmem>>, vector<256x128xbf16>
      tpu.vector_store %arg12[%c17, %c0_35], %56 {strides = array<i32>} : memref<288x384xbf16, #tpu.memory_space<vmem>>, vector<256x128xbf16>,
      %c16 = arith.constant 16 : index
      %c128 = arith.constant 128 : index
      %64 = vector.load %arg12[%c16, %c128] : memref<288x384xbf16, #tpu.memory_space<vmem>>, vector<256x128xbf16>
      tpu.vector_store %arg12[%c16, %c128], %35 {strides = array<i32>} : memref<288x384xbf16, #tpu.memory_space<vmem>>, vector<256x128xbf16>,
      %c15 = arith.constant 15 : index
      %c256 = arith.constant 256 : index
      %65 = vector.load %arg12[%c15, %c256] : memref<288x384xbf16, #tpu.memory_space<vmem>>, vector<256x128xbf16>
      tpu.vector_store %arg12[%c15, %c256], %59 {strides = array<i32>} : memref<288x384xbf16, #tpu.memory_space<vmem>>, vector<256x128xbf16>,
      %c0_36 = arith.constant 0 : index
      %c0_37 = arith.constant 0 : index
      %66 = vector.load %arg12[%c0_36, %c0_37] : memref<288x384xbf16, #tpu.memory_space<vmem>>, vector<256x384xbf16>
      %c0_38 = arith.constant 0 : index
      %c0_39 = arith.constant 0 : index
      %c0_40 = arith.constant 0 : index
      %67 = vector.load %arg8[%c0_38, %c0_39, %c0_40] : memref<3x384x128xbf16, #tpu.memory_space<vmem>>, vector<1x384x128xbf16>
      %68 = vector.shape_cast %67 : vector<1x384x128xbf16> to vector<384x128xbf16>
      %cst_41 = arith.constant dense<0.000000e+00> : vector<256x128xf32>
      %69 = tpu.matmul %66, %68, %cst_41 {dimension_numbers = #tpu.dot_dimension_numbers<[1], [0], [0], [1], [0, 0, 1, 1], [], []>} : vector<256x384xbf16>, vector<384x128xbf16>, vector<256x128xf32> -> vector<256x128xf32>
      %c16_42 = arith.constant 16 : index
      %c0_43 = arith.constant 0 : index
      %70 = vector.load %arg12[%c16_42, %c0_43] : memref<288x384xbf16, #tpu.memory_space<vmem>>, vector<256x384xbf16>
      %c1 = arith.constant 1 : index
      %c0_44 = arith.constant 0 : index
      %c0_45 = arith.constant 0 : index
      %71 = vector.load %arg8[%c1, %c0_44, %c0_45] : memref<3x384x128xbf16, #tpu.memory_space<vmem>>, vector<1x384x128xbf16>
      %72 = vector.shape_cast %71 : vector<1x384x128xbf16> to vector<384x128xbf16>
      %cst_46 = arith.constant dense<0.000000e+00> : vector<256x128xf32>
      %73 = tpu.matmul %70, %72, %cst_46 {dimension_numbers = #tpu.dot_dimension_numbers<[1], [0], [0], [1], [0, 0, 1, 1], [], []>} : vector<256x384xbf16>, vector<384x128xbf16>, vector<256x128xf32> -> vector<256x128xf32>
      %74 = arith.addf %69, %73 : vector<256x128xf32>
      %c32 = arith.constant 32 : index
      %c0_47 = arith.constant 0 : index
      %75 = vector.load %arg12[%c32, %c0_47] : memref<288x384xbf16, #tpu.memory_space<vmem>>, vector<256x384xbf16>
      %c2 = arith.constant 2 : index
      %c0_48 = arith.constant 0 : index
      %c0_49 = arith.constant 0 : index
      %76 = vector.load %arg8[%c2, %c0_48, %c0_49] : memref<3x384x128xbf16, #tpu.memory_space<vmem>>, vector<1x384x128xbf16>
      %77 = vector.shape_cast %76 : vector<1x384x128xbf16> to vector<384x128xbf16>
      %cst_50 = arith.constant dense<0.000000e+00> : vector<256x128xf32>
      %78 = tpu.matmul %75, %77, %cst_50 {dimension_numbers = #tpu.dot_dimension_numbers<[1], [0], [0], [1], [0, 0, 1, 1], [], []>} : vector<256x384xbf16>, vector<384x128xbf16>, vector<256x128xf32> -> vector<256x128xf32>
      %79 = arith.addf %74, %78 : vector<256x128xf32>
      %c0_51 = arith.constant 0 : index
      %c0_52 = arith.constant 0 : index
      %80 = vector.load %arg11[%c0_51, %c0_52] : memref<256x128xbf16, #tpu.memory_space<vmem>>, vector<256x128xbf16>
      %81 = arith.extf %80 : vector<256x128xbf16> to vector<256x128xf32>
      %82 = arith.addf %81, %79 : vector<256x128xf32>
      %83 = arith.truncf %82 : vector<256x128xf32> to vector<256x128xbf16>
      %c0_53 = arith.constant 0 : index
      %c0_54 = arith.constant 0 : index
      %c0_55 = arith.constant 0 : index
      %84 = vector.load %arg9[%c0_53, %c0_54, %c0_55] : memref<1x256x128xbf16, #tpu.memory_space<vmem>>, vector<1x256x128xbf16>
      %85 = vector.shape_cast %84 : vector<1x256x128xbf16> to vector<256x128xbf16>
      %86 = vector.shape_cast %83 : vector<256x128xbf16> to vector<1x256x128xbf16>
      tpu.vector_store %arg9[%c0_53, %c0_54, %c0_55], %86 {strides = array<i32>} : memref<1x256x128xbf16, #tpu.memory_space<vmem>>, vector<1x256x128xbf16>,
    } else {
    }
    return
  }
  func.func @transform_0(%arg0: i32, %arg1: i32) -> (i32, i32, i32) {
    %c0_i32 = arith.constant 0 : i32
    %c0_i32_0 = arith.constant 0 : i32
    return %arg0, %c0_i32, %arg1 : i32, i32, i32
  }
  func.func @transform_1(%arg0: i32, %arg1: i32) -> (i32, i32) {
    %c0_i32 = arith.constant 0 : i32
    %c0_i32_0 = arith.constant 0 : i32
    return %c0_i32, %arg1 : i32, i32
  }
  func.func @transform_2(%arg0: i32, %arg1: i32) -> (i32, i32) {
    %c0_i32 = arith.constant 0 : i32
    %c0_i32_0 = arith.constant 0 : i32
    return %c0_i32, %arg1 : i32, i32
  }
  func.func @transform_3(%arg0: i32, %arg1: i32) -> (i32, i32) {
    %c0_i32 = arith.constant 0 : i32
    %c0_i32_0 = arith.constant 0 : i32
    return %arg1, %c0_i32 : i32, i32
  }
  func.func @transform_4(%arg0: i32, %arg1: i32) -> (i32, i32) {
    %c0_i32 = arith.constant 0 : i32
    %c0_i32_0 = arith.constant 0 : i32
    %c0_i32_1 = arith.constant 0 : i32
    return %c0_i32, %c0_i32_0 : i32, i32
  }
  func.func @transform_5(%arg0: i32, %arg1: i32) -> (i32, i32) {
    %c0_i32 = arith.constant 0 : i32
    %c0_i32_0 = arith.constant 0 : i32
    %c0_i32_1 = arith.constant 0 : i32
    return %c0_i32, %c0_i32_0 : i32, i32
  }
  func.func @transform_6(%arg0: i32, %arg1: i32) -> (i32, i32, i32) {
    %c0_i32 = arith.constant 0 : i32
    %c0_i32_0 = arith.constant 0 : i32
    %c0_i32_1 = arith.constant 0 : i32
    %c0_i32_2 = arith.constant 0 : i32
    return %c0_i32, %c0_i32_0, %c0_i32_1 : i32, i32, i32
  }
  func.func @transform_7(%arg0: i32, %arg1: i32) -> (i32, i32, i32) {
    %c0_i32 = arith.constant 0 : i32
    %c0_i32_0 = arith.constant 0 : i32
    %c0_i32_1 = arith.constant 0 : i32
    return %arg0, %c0_i32, %c0_i32_0 : i32, i32, i32
  }
}

</mosaic_0001>

<bundles_post_ra>
// kernel: dense_block_forward.2
= control target key start
LH: loop header
LB: loop body
LE: loop exit
PB: predicated region body
PF: predicated region fallthrough
CT: control target
= control target key end

     0   :  { %s5839_s24 = smov 0   ;;  %s5841_s25 = smov 0   ;;  %s7935_s0 = inlined_call_operand.vmem [shape: bf16[2,256,128], index: 0, kind: input, shape index: {}, may-alias: {0,7}]   ;;  %s7936_s1 = inlined_call_operand.vmem [shape: f32[1,128], index: 1, kind: input, shape index: {}]   ;;  %s7937_s2 = inlined_call_operand.vmem [shape: f32[1,128], index: 2, kind: input, shape index: {}]   ;;  %s7938_s3 = inlined_call_operand.vmem [shape: bf16[128,128], index: 3, kind: input, shape index: {}]   ;;  %s7939_s4 = inlined_call_operand.vmem [shape: f32[1,128], index: 4, kind: input, shape index: {}]   ;;  %s7940_s5 = inlined_call_operand.vmem [shape: f32[1,128], index: 5, kind: input, shape index: {}]   ;;  %s7941_s6 = inlined_call_operand.vmem [shape: bf16[3,384,128], index: 6, kind: input, shape index: {}]   ;;  %s7942_s7 = inlined_call_operand.vmem [shape: bf16[2,256,128], index: 7, kind: output, shape index: {}, may-alias: {0,7}]  }
   0x1   :  { %s5843_s26 = smov 0  }
   0x2 LB: > { %s29_s27 = sadd.s32 1, %s5791_s25  ;;  %p4388_p0 = scmp.ge.s32.totalorder %s5795_s26, 1  ;;  %s5795_s26 = sphi %s5843_s26, %s17_s26   ;;  %s5791_s25 = sphi %s5841_s25, %s8148_s25   ;;  %s5787_s24 = sphi %s5839_s24, %s8147_s24  }
   0x3   : > { %p31_p1 = scmp.ge.s32.totalorder %s29_s27, 2  ;;  %p281_p2 = scmp.lt.s32.totalorder %s5795_s26, 3 }
   0x5   : > { %s8150_s27 = smov (%p31_p1, %s29_s27), 0  ;;  %p282_p3 = pnand %p4388_p0, %p281_p2 }
   0x7   : > { %285 = sbr.rel (%p282_p3) target bundleno = 842 (0x34a), region = 48 }
   0xe   : > { %v5673_v0 = vld [vmem:[%s7938_s3] sm:$0xff]   ;;  %p327_p4 = scmp.lt.s32.totalorder %s5787_s24, 1  ;;  %v5674_v1 = vld [vmem:[%s7938_s3 + $0x8] sm:$0xff]   ;;  %v5675_v2 = vld [vmem:[%s7938_s3 + $0x10] sm:$0xff]   ;;  %vm1979_vm0 = vcmask 1040384   ;;  %vm1991_vm3 = vcmask 1047559  }
   0xf   : > { %5295 = vmatprep.subr.bf16.mxu1 %v5673_v0  ;;  %v5676_v3 = vld [vmem:[%s7938_s3 + $0x18] sm:$0xff]   ;;  %v5883_v5 = vld [vmem:[%s7936_s1] ss:$0 sm:$0xff]  ;;  %v5678_v35 = vld [vmem:[%s7938_s3 + $0x28] sm:$0xff]   ;;  %vm7943_vm1 = vsmask.f32 256 }
  0x10   : > { %s8152_s24 = smov (!%p327_p4, %s5787_s24), 1  ;;  %5296 = vmatpush3.bf16.msra.mxu1 %v5673_v0  ;;  %v5891_v11 = vld [vmem:[%s7937_s2] ss:$0 sm:$0xff]  ;;  %v5679_v43 = vld [vmem:[%s7938_s3 + $0x30] sm:$0xff]   ;;  %v5680_v61 = vld [vmem:[%s7938_s3 + $0x38] sm:$0xff]   ;;  %vm5798_vm8 = vmmov 1  }
  0x11   : > { %5297 = vmatprep.subr.bf16.mxu1 %v5674_v1  ;;  %s4655_s11 = sshll.u32 %s8152_s24, 7  ;;  %v5677_v20 = vld [vmem:[%s7938_s3 + $0x20] sm:$0xff]   ;;  %vm6085_vm2 = vmand %vm1979_vm0, %vm7943_vm1  ;;  %vm1992_vm4 = vsmask.f32 7966 }
  0x12   : > { %s5874_s14 = scalar_lea.vmem %s7935_s0, %s4655_s11  ;;  %vm6110_vm5 = vmand %vm1991_vm3, %vm1992_vm4  ;;  %s7851_s9 = scalar_lea.vmem %s7942_s7, %s4655_s11 }
  0x13   : > { %v4690_v4 = vld [vmem:[%s5874_s14] sm:$0xff]   ;;  %v4833_v8 = vld [vmem:[%s5874_s14 + $0x8] sm:$0xff]   ;;  %v4834_v9 = vld [vmem:[%s5874_s14 + $0x10] sm:$0xff]  }
  0x14   : > { %5298 = vmatpush3.bf16.msra.mxu1 %v5674_v1  ;;  %v4691_v6 = vunpack.c.l.bf16 %v4690_v4  ;;  %v4692_v7 = vunpack.c.h.bf16 %v4690_v4  ;;  %v4835_v10 = vld [vmem:[%s5874_s14 + $0x18] sm:$0xff]   ;;  %v4695_v12 = vunpack.c.l.bf16 %v4833_v8  ;;  %v4696_v13 = vunpack.c.h.bf16 %v4833_v8  ;;  %v4836_v26 = vld [vmem:[%s5874_s14 + $0x20] sm:$0xff]   ;;  %v4837_v31 = vld [vmem:[%s5874_s14 + $0x28] sm:$0xff]  }
  0x15   : > { %5299 = vmatprep.subr.bf16.mxu1 %v5675_v2  ;;  %v4699_v14 = vunpack.c.l.bf16 %v4834_v9  ;;  %v4700_v15 = vunpack.c.h.bf16 %v4834_v9  ;;  %v4703_v18 = vunpack.c.l.bf16 %v4835_v10  ;;  %v4704_v19 = vunpack.c.h.bf16 %v4835_v10  ;;  %v4838_v37 = vld [vmem:[%s5874_s14 + $0x30] sm:$0xff]   ;;  %v4839_v38 = vld [vmem:[%s5874_s14 + $0x38] sm:$0xff]   ;;  %v4840_v56 = vld [vmem:[%s5874_s14 + $0x40] sm:$0xff]  }
  0x16   : > { %v462_v16 = vmul.f32 %v4691_v6, %v5883_v5  ;;  %v463_v17 = vmul.f32 %v4692_v7, %v5883_v5  ;;  %v464_v21 = vmul.f32 %v4695_v12, %v5883_v5  ;;  %v465_v22 = vmul.f32 %v4696_v13, %v5883_v5  ;;  %v4841_v1 = vld [vmem:[%s5874_s14 + $0x48] sm:$0xff]   ;;  %v4842_v7 = vld [vmem:[%s5874_s14 + $0x50] sm:$0xff]   ;;  %vm1656_vm9 = vmpackc.low %vm5798_vm8, %vm5798_vm8 }
  0x17   : > { %v466_v23 = vmul.f32 %v4699_v14, %v5883_v5  ;;  %v467_v29 = vmul.f32 %v4700_v15, %v5883_v5  ;;  %v468_v30 = vmul.f32 %v4703_v18, %v5883_v5  ;;  %v469_v34 = vmul.f32 %v4704_v19, %v5883_v5 }
  0x18   : > { %5300 = vmatpush3.bf16.msra.mxu1 %v5675_v2  ;;  %v501_v24 = vadd.f32 %v5891_v11, %v462_v16  ;;  %v502_v25 = vadd.f32 %v5891_v11, %v463_v17  ;;  %v503_v27 = vadd.f32 %v5891_v11, %v464_v21  ;;  %v504_v28 = vadd.f32 %v5891_v11, %v465_v22  ;;  %v4843_v16 = vld [vmem:[%s5874_s14 + $0x58] sm:$0xff]   ;;  %v5681_v21 = vld [vmem:[%s7941_s6 + $0x100] sm:$0xff]  }
  0x19   : > { %5301 = vmatprep.subr.bf16.mxu1 %v5676_v3  ;;  %v5914_v36 = vadd.f32 %v5891_v11, %v466_v23  ;;  %v4707_v42 = vunpack.c.l.bf16 %v4836_v26  ;;  %v506_v44 = vadd.f32 %v5891_v11, %v467_v29  ;;  %v5923_v45 = vadd.f32 %v5891_v11, %v468_v30  ;;  %v4844_v30 = vld [vmem:[%s5874_s14 + $0x60] sm:$0xff]  }
  0x1a   : > { %v533_v32 = vmax.f32 %v501_v24, 0.0  ;;  %v534_v33 = vmax.f32 %v502_v25, 0.0  ;;  %v535_v40 = vmax.f32 %v503_v27, 0.0  ;;  %v536_v41 = vmax.f32 %v504_v28, 0.0 }
  0x1b   : > { %v4708_v46 = vunpack.c.h.bf16 %v4836_v26  ;;  %v4711_v47 = vunpack.c.l.bf16 %v4837_v31  ;;  %v5926_v48 = vadd.f32 %v5891_v11, %v469_v34  ;;  %v470_v49 = vmul.f32 %v4707_v42, %v5883_v5 }
  0x1c   : > { %5302 = vmatpush3.bf16.msra.mxu1 %v5676_v3  ;;  %v597_v39 = vpack.c.bf16 %v534_v33, %v533_v32  ;;  %v4712_v50 = vunpack.c.h.bf16 %v4837_v31  ;;  %v4715_v51 = vunpack.c.l.bf16 %v4838_v37  ;;  %v4716_v54 = vunpack.c.h.bf16 %v4838_v37 }
  0x1d   : > { %5303 = vmatprep.subr.bf16.mxu1 %v5677_v20  ;;  %v471_v52 = vmul.f32 %v4708_v46, %v5883_v5  ;;  %v472_v53 = vmul.f32 %v4711_v47, %v5883_v5  ;;  %v4719_v55 = vunpack.c.l.bf16 %v4839_v38  ;;  %v5933_v57 = vadd.f32 %v5891_v11, %v470_v49 }
  0x1e   : > { %5311 = vmatprep.mubr.bf16.mxu1 %v597_v39  ;;  %v473_v58 = vmul.f32 %v4712_v50, %v5883_v5  ;;  %v474_v59 = vmul.f32 %v4715_v51, %v5883_v5  ;;  %v4720_v60 = vunpack.c.h.bf16 %v4839_v38  ;;  %v475_v0 = vmul.f32 %v4716_v54, %v5883_v5 }
  0x1f   : > { %v5941_v62 = vadd.f32 %v5891_v11, %v471_v52  ;;  %v5944_v63 = vadd.f32 %v5891_v11, %v472_v53  ;;  %v537_v2 = vmax.f32 %v5914_v36, 0.0  ;;  %v538_v3 = vmax.f32 %v506_v44, 0.0  ;;  %v4846_v53 = vld [vmem:[%s5874_s14 + $0x70] sm:$0xff]  }
  0x20   : > { %5304 = vmatpush3.bf16.msra.mxu1 %v5677_v20  ;;  %v5950_v4 = vadd.f32 %v5891_v11, %v473_v58  ;;  %v5953_v6 = vadd.f32 %v5891_v11, %v474_v59  ;;  %v539_v8 = vmax.f32 %v5923_v45, 0.0  ;;  %v540_v9 = vmax.f32 %v5926_v48, 0.0  ;;  %v4845_v48 = vld [vmem:[%s5874_s14 + $0x68] sm:$0xff]  }
  0x21   : > { %5305 = vmatprep.subr.bf16.mxu1 %v5678_v35  ;;  %v476_v10 = vmul.f32 %v4719_v55, %v5883_v5  ;;  %v598_v12 = vpack.c.bf16 %v536_v41, %v535_v40  ;;  %v541_v13 = vmax.f32 %v5933_v57, 0.0  ;;  %v477_v14 = vmul.f32 %v4720_v60, %v5883_v5 }
  0x22   : > { %v4723_v15 = vunpack.c.l.bf16 %v4840_v56  ;;  %v542_v17 = vmax.f32 %v5941_v62, 0.0  ;;  %v543_v18 = vmax.f32 %v5944_v63, 0.0  ;;  %v5965_v19 = vadd.f32 %v5891_v11, %v475_v0  ;;  %v4847_v62 = vld [vmem:[%s5874_s14 + $0x78] sm:$0xff]  }
  0x23   : > { %v4724_v20 = vunpack.c.h.bf16 %v4840_v56  ;;  %v544_v22 = vmax.f32 %v5950_v4, 0.0  ;;  %v545_v23 = vmax.f32 %v5953_v6, 0.0  ;;  %v4727_v25 = vunpack.c.l.bf16 %v4841_v1 }
  0x24   : > { %5306 = vmatpush3.bf16.msra.mxu1 %v5678_v35  ;;  %v478_v24 = vmul.f32 %v4723_v15, %v5883_v5  ;;  %v5974_v26 = vadd.f32 %v5891_v11, %v476_v10  ;;  %v4728_v28 = vunpack.c.h.bf16 %v4841_v1  ;;  %v4731_v29 = vunpack.c.l.bf16 %v4842_v7 }
  0x25   : > { %5307 = vmatprep.subr.bf16.mxu1 %v5679_v43  ;;  %v479_v27 = vmul.f32 %v4724_v20, %v5883_v5  ;;  %v599_v31 = vpack.c.bf16 %v538_v3, %v537_v2  ;;  %v5979_v32 = vadd.f32 %v5891_v11, %v477_v14  ;;  %v480_v33 = vmul.f32 %v4727_v25, %v5883_v5 }
  0x26   : > { %v4732_v34 = vunpack.c.h.bf16 %v4842_v7  ;;  %v5983_v35 = vadd.f32 %v5891_v11, %v478_v24  ;;  %v481_v36 = vmul.f32 %v4728_v28, %v5883_v5  ;;  %v482_v37 = vmul.f32 %v4731_v29, %v5883_v5 }
  0x27   : > { %v4735_v38 = vunpack.c.l.bf16 %v4843_v16  ;;  %v546_v39 = vmax.f32 %v5965_v19, 0.0  ;;  %v5989_v40 = vadd.f32 %v5891_v11, %v479_v27  ;;  %v4736_v42 = vunpack.c.h.bf16 %v4843_v16 }
  0x28   : > { %5308 = vmatpush3.bf16.msra.mxu1 %v5679_v43  ;;  %v483_v41 = vmul.f32 %v4732_v34, %v5883_v5  ;;  %v5682_v43 = vld [vmem:[%s7941_s6 + $0xc0] sm:$0xff]   ;;  %v547_v44 = vmax.f32 %v5974_v26, 0.0  ;;  %v5997_v45 = vadd.f32 %v5891_v11, %v480_v33  ;;  %v6000_v46 = vadd.f32 %v5891_v11, %v481_v36 }
  0x29   : > { %5309 = vmatprep.subr.bf16.mxu1 %v5680_v61  ;;  %v484_v47 = vmul.f32 %v4735_v38, %v5883_v5  ;;  %v6005_v49 = vadd.f32 %v5891_v11, %v482_v37  ;;  %v485_v51 = vmul.f32 %v4736_v42, %v5883_v5  ;;  %v4739_v52 = vunpack.c.l.bf16 %v4844_v30  ;;  %v5685_v26 = vld [vmem:[%s7941_s6 + $0x140] sm:$0xff]  }
  0x2a   : > { %v6008_v50 = vadd.f32 %v5891_v11, %v483_v41  ;;  %v600_v54 = vpack.c.bf16 %v540_v9, %v539_v8  ;;  %v601_v55 = vpack.c.bf16 %v542_v17, %v541_v13  ;;  %v548_v56 = vmax.f32 %v5979_v32, 0.0  ;;  %5343 = vmatprep.subr.bf16.mxu0 %v5685_v26 }
  0x2b   : > { %v549_v57 = vmax.f32 %v5983_v35, 0.0  ;;  %v550_v58 = vmax.f32 %v5989_v40, 0.0  ;;  %v523_v59 = vadd.f32 %v5891_v11, %v484_v47  ;;  %v4740_v60 = vunpack.c.h.bf16 %v4844_v30  ;;  %5344 = vmatpush3.bf16.msra.mxu0 %v5685_v26 }
  0x2c   : > { %5310 = vmatpush3.bf16.msra.mxu1 %v5680_v61  ;;  %v486_v61 = vmul.f32 %v4739_v52, %v5883_v5  ;;  %v551_v0 = vmax.f32 %v5997_v45, 0.0  ;;  %v552_v1 = vmax.f32 %v6000_v46, 0.0  ;;  %v4743_v2 = vunpack.c.l.bf16 %v4845_v48  ;;  %v5689_v52 = vld [vmem:[%s7941_s6 + $0x118] sm:$0xff]  }
  0x2d   : > { %4887 = vmatprep.subr.bf16.mxu1 %v5681_v21  ;;  %v4744_v3 = vunpack.c.h.bf16 %v4845_v48  ;;  %v553_v7 = vmax.f32 %v6005_v49, 0.0  ;;  %v554_v8 = vmax.f32 %v6008_v50, 0.0  ;;  %v524_v9 = vadd.f32 %v5891_v11, %v485_v51  ;;  %v5688_v51 = vld [vmem:[%s7941_s6 + $0x148] sm:$0xff]  }
  0x2e   : > { %v487_v10 = vmul.f32 %v4740_v60, %v5883_v5  ;;  %v488_v13 = vmul.f32 %v4743_v2, %v5883_v5  ;;  %v4747_v14 = vunpack.c.l.bf16 %v4846_v53  ;;  %v4748_v15 = vunpack.c.h.bf16 %v4846_v53  ;;  %5345 = vmatprep.subr.bf16.mxu0 %v5688_v51  ;;  %v5690_v53 = vld [vmem:[%s7941_s6 + $0xd8] sm:$0xff]   ;;  %v5696_v2 = vld [vmem:[%s7941_s6 + $0xe8] sm:$0xff]  }
  0x2f   : > { %5312 = vmatmul.mubr.bf16.vlgmr.msra.gmra.mrb[0].mxu1 %v598_v12  ;;  %v525_v12 = vadd.f32 %v5891_v11, %v486_v61  ;;  %v555_v16 = vmax.f32 %v523_v59, 0.0  ;;  %v489_v20 = vmul.f32 %v4744_v3, %v5883_v5  ;;  %v4751_v21 = vunpack.c.l.bf16 %v4847_v62  ;;  %5346 = vmatpush3.bf16.msra.mxu0 %v5688_v51  ;;  %v1985_v59 = vld [vmem:[#allocation4 + $0x20] sm:$0x1]  ;;  %v5694_v61 = vld [vmem:[%s7941_s6 + $0x158] sm:$0xff]  }
  0x30   : > { %5315 = vmatprep.mubr.bf16.mxu1 %v599_v31  ;;  %4888 = vmatpush3.bf16.msra.mxu1 %v5682_v43  ;;  %v526_v17 = vadd.f32 %v5891_v11, %v487_v10  ;;  %v490_v24 = vmul.f32 %v4747_v14, %v5883_v5  ;;  %v491_v25 = vmul.f32 %v4748_v15, %v5883_v5  ;;  %v556_v27 = vmax.f32 %v524_v9, 0.0  ;;  %v5697_v3 = vld [vmem:[%s7941_s6 + $0x160] sm:$0xff]   ;;  %v5699_v14 = vld [vmem:[%s7941_s6 + $0xf0] sm:$0xff]   ;;  %v5700_v15 = vld [vmem:[%s7941_s6 + $0x168] sm:$0xff]  }
  0x31   : > { %v527_v28 = vadd.f32 %v5891_v11, %v488_v13  ;;  %v4752_v29 = vunpack.c.h.bf16 %v4847_v62  ;;  %v492_v30 = vmul.f32 %v4751_v21, %v5883_v5  ;;  %v557_v31 = vmax.f32 %v525_v12, 0.0  ;;  %v2000_v12 = vld [vmem:[#allocation4 + $0x190] sm:$0x80]  ;;  %v5704_v21 = vld [vmem:[%s7941_s6 + $0x178] sm:$0xff]   ;;  %v5724_v10 = vld [vmem:[%s7941_s6 + $0x1c8] sm:$0xff]  }
  0x32   : > { %v558_v32 = vmax.f32 %v526_v17, 0.0  ;;  %v529_v33 = vadd.f32 %v5891_v11, %v490_v24  ;;  %v530_v34 = vadd.f32 %v5891_v11, %v491_v25  ;;  %v528_v35 = vadd.f32 %v5891_v11, %v489_v20  ;;  %v5702_v17 = vld [vmem:[%s7941_s6 + $0xf8] sm:$0xff]   ;;  %v5703_v20 = vld [vmem:[%s7941_s6 + $0x170] sm:$0xff]   ;;  %v5705_v24 = vld [vmem:[%s7941_s6 + $0x40] sm:$0xff]  }
  0x33   : > { %v493_v36 = vmul.f32 %v4752_v29, %v5883_v5  ;;  %v531_v37 = vadd.f32 %v5891_v11, %v492_v30  ;;  %v559_v41 = vmax.f32 %v527_v28, 0.0  ;;  %v602_v45 = vpack.c.bf16 %v544_v22, %v543_v18  ;;  %v5683_v22 = vld [vmem:[%s7941_s6 + $0x108] sm:$0xff]   ;;  %v1994_v30 = vld [vmem:[#allocation4 + $0x180] sm:$0x80] }
  0x34   : > { %v561_v38 = vmax.f32 %v529_v33, 0.0  ;;  %v562_v40 = vmax.f32 %v530_v34, 0.0  ;;  %v603_v47 = vpack.c.bf16 %v546_v39, %v545_v23  ;;  %v560_v5 = vmax.f32 %v528_v35, 0.0  ;;  %v5684_v23 = vld [vmem:[%s7941_s6 + $0xc8] sm:$0xff]   ;;  %4889 = vmatprep.subr.bf16.mxu1 %v5683_v22  ;;  %v5686_v39 = vld [vmem:[%s7941_s6 + $0x110] sm:$0xff]  }
  0x35   : > { %v532_v42 = vadd.f32 %v5891_v11, %v493_v36  ;;  %v563_v43 = vmax.f32 %v531_v37, 0.0  ;;  %v604_v11 = vpack.c.bf16 %v548_v56, %v547_v44  ;;  %v605_v50 = vpack.c.bf16 %v550_v58, %v549_v57  ;;  %4890 = vmatpush3.bf16.msra.mxu1 %v5684_v23  ;;  %v5687_v44 = vld [vmem:[%s7941_s6 + $0xd0] sm:$0xff]   ;;  %v5692_v56 = vld [vmem:[%s7941_s6 + $0x120] sm:$0xff]   ;;  %v1982_v58 = vld [vmem:[#allocation4 + $0x18] sm:$0x1] }
  0x36   : > { %v611_v46 = vpack.c.bf16 %v562_v40, %v561_v38  ;;  %v606_v63 = vpack.c.bf16 %v552_v1, %v551_v0  ;;  %v607_v4 = vpack.c.bf16 %v554_v8, %v553_v7  ;;  %v608_v18 = vpack.c.bf16 %v556_v27, %v555_v16  ;;  %4891 = vmatprep.subr.bf16.mxu1 %v5686_v39  ;;  %v5693_v57 = vld [vmem:[%s7941_s6 + $0xe0] sm:$0xff]   ;;  %v5695_v1 = vld [vmem:[%s7941_s6 + $0x128] sm:$0xff]   ;;  %v5698_v8 = vld [vmem:[%s7941_s6 + $0x130] sm:$0xff]  }
  0x37   : > { %5316 = vmatmul.mubr.bf16.gmra.mrb[4].mxu1 %v600_v54  ;;  %v564_v48 = vmax.f32 %v532_v42, 0.0  ;;  %v609_v6 = vpack.c.bf16 %v558_v32, %v557_v31  ;;  %v610_v19 = vpack.c.bf16 %v560_v5, %v559_v41  ;;  %v5691_v54 = vld [vmem:[%s7941_s6 + $0x150] sm:$0xff]   ;;  %v7954_v60 = vmov 0  ;;  %v1988_v7 = vld [vmem:[#allocation4 + $0x28] sm:$0x1]  ;;  %v5701_v16 = vld [vmem:[%s7941_s6 + $0x138] sm:$0xff]  }
  0x38   : > { %5319 = vmatprep.mubr.bf16.mxu1 %v601_v55  ;;  %5347 = vmatprep.subr.bf16.mxu0 %v5691_v54  ;;  %v7945_v55 = vmov 0   ;;  %v7955_v60 = vsel %vm6085_vm2, 4294967295, %v7954_v60  ;;  %v1983_v62 = vsel %vm6085_vm2, 0, %v1982_v58  ;;  %v1986_v0 = vsel %vm6085_vm2, 0, %v1985_v59  ;;  %v1997_v25 = vld [vmem:[#allocation4 + $0x188] sm:$0x80] }
  0x39   : > { %v612_v49 = vpack.c.bf16 %v564_v48, %v563_v43  ;;  %4892 = vmatpush3.bf16.msra.mxu1 %v5687_v44  ;;  %5348 = vmatpush3.bf16.msra.mxu0 %v5691_v54  ;;  %1976 = vst [vmem:[#allocation4] sm:$0xff] %v7945_v55  ;;  %1978 = vst [vmem:[#allocation4 + $0x10] sm:$0xff] %v7945_v55  ;;  %v1989_v9 = vsel %vm6085_vm2, 0, %v1988_v7  ;;  %v2001_v13 = vsel %vm6110_vm5, 0, %v2000_v12  ;;  %v1998_v27 = vsel %vm6110_vm5, 0, %v1997_v25 }
  0x3a   : > { %4893 = vmatprep.subr.bf16.mxu1 %v5689_v52  ;;  %2003 = vst [vmem:[#allocation4 + $0x198] sm:$0xff] %v7945_v55  ;;  %1984 = vst [vmem:[#allocation4 + $0x18] sm:$0x1] %v1983_v62  ;;  %5349 = vmatprep.subr.bf16.mxu0 %v5694_v61  ;;  %v1207_v28 = vlaneseq  ;;  %v1995_v32 = vsel %vm6110_vm5, 0, %v1994_v30  ;;  %v6501_v40 = vld [vmem:[%s7939_s4] ss:$0 sm:$0xff] }
  0x3b   : > { %1987 = vst [vmem:[#allocation4 + $0x20] sm:$0x1] %v1986_v0  ;;  %1990 = vst [vmem:[#allocation4 + $0x28] sm:$0x1] %v1989_v9 }
  0x3c   : > { %2002 = vst [vmem:[#allocation4 + $0x190] sm:$0x80] %v2001_v13  ;;  %1999 = vst [vmem:[#allocation4 + $0x188] sm:$0x80] %v1998_v27  ;;  %v6139_v29 = vshrl.u32 %v1207_v28, 7 }
  0x3d   : > { %4894 = vmatpush3.bf16.msra.mxu1 %v5690_v53  ;;  %5350 = vmatpush3.bf16.msra.mxu0 %v5694_v61  ;;  %1996 = vst [vmem:[#allocation4 + $0x180] sm:$0x80] %v1995_v32 }
  0x3e   : > { %4895 = vmatprep.subr.bf16.mxu1 %v5692_v56  ;;  %5351 = vmatprep.subr.bf16.mxu0 %v5697_v3  ;;  %v1211_v31 = vadd.s32 24, %v6139_v29  ;;  %v1210_v33 = vadd.s32 16, %v6139_v29  ;;  %v1209_v36 = vadd.s32 8, %v6139_v29  ;;  %v1214_v37 = vadd.s32 48, %v6139_v29 }
  0x3f   : > { %5320 = vmatmul.mubr.bf16.gmra.mrb[8].mxu1 %v602_v45  ;;  %v1215_v42 = vadd.s32 56, %v6139_v29  ;;  %v1244_v43 = vand.u32 15, %v6139_v29  ;;  %v1212_v45 = vadd.s32 32, %v6139_v29  ;;  %v1213_v5 = vadd.s32 40, %v6139_v29 }
  0x40   : > { %5323 = vmatprep.mubr.bf16.mxu1 %v603_v47  ;;  %v1265_v34 = vand.u32 15, %v1211_v31  ;;  %v1258_v35 = vand.u32 15, %v1210_v33  ;;  %v1251_v41 = vand.u32 15, %v1209_v36  ;;  %v1286_v47 = vand.u32 15, %v1214_v37 }
  0x41   : > { %4896 = vmatpush3.bf16.msra.mxu1 %v5693_v57  ;;  %5352 = vmatpush3.bf16.msra.mxu0 %v5697_v3  ;;  %v1219_v48 = vadd.s32 88, %v6139_v29  ;;  %vm6180_vm13 = vcmp.ne.s32.totalorder %v1244_v43, 0  ;;  %v1279_v26 = vand.u32 15, %v1213_v5  ;;  %v1216_v39 = vadd.s32 64, %v6139_v29 }
  0x42   : > { %4897 = vmatprep.subr.bf16.mxu1 %v5695_v1  ;;  %5353 = vmatprep.subr.bf16.mxu0 %v5700_v15  ;;  %vm6147_vm6 = vcmp.ne.s32.totalorder %v1265_v34, 15  ;;  %vm6151_vm7 = vcmp.ne.s32.totalorder %v1258_v35, 0  ;;  %vm6172_vm12 = vcmp.ne.s32.totalorder %v1251_v41, 15  ;;  %vm6188_vm14 = vcmp.ne.s32.totalorder %v1286_v47, 0  ;;  %vm1832_vm0 = vmpackc.low %vm6180_vm13, %vm6180_vm13 }
  0x43   : > { %vm1659_vm10 = vmpackc.low %vm6147_vm6, %vm6147_vm6  ;;  %v1321_v44 = vand.u32 15, %v1219_v48  ;;  %v1222_v51 = vadd.s32 112, %v6139_v29  ;;  %v1223_v56 = vadd.s32 120, %v6139_v29  ;;  %v1221_v61 = vadd.s32 104, %v6139_v29  ;;  %v5728_v48 = vld [vmem:[%s7941_s6 + $0x190] sm:$0xff]  }
  0x44   : > { %vm1834_vm11 = vmpackc.low %vm6151_vm7, %vm6151_vm7  ;;  %vm6220_vm7 = vcmp.ne.s32.totalorder %v1279_v26, 15  ;;  %v1300_v1 = vand.u32 15, %v1216_v39  ;;  %v6226_v3 = vsel %vm1832_vm0, 65537, %v7945_v55  ;;  %v1227_v9 = vadd.s32 152, %v6139_v29 }
  0x45   : > { %4898 = vmatpush3.bf16.msra.mxu1 %v5696_v2  ;;  %5354 = vmatpush3.bf16.msra.mxu0 %v5700_v15  ;;  %v6186_v22 = vsel %vm1834_vm11, 65537, %v7945_v55  ;;  %vm1657_vm15 = vmpackc.low %vm6172_vm12, %vm6172_vm12  ;;  %v1220_v2 = vadd.s32 96, %v6139_v29  ;;  %v1226_v15 = vadd.s32 144, %v6139_v29  ;;  %v1224_v28 = vadd.s32 128, %v6139_v29 }
  0x46   : > { %4899 = vmatprep.subr.bf16.mxu1 %v5698_v8  ;;  %5355 = vmatprep.subr.bf16.mxu0 %v5703_v20  ;;  %vm1838_vm4 = vmpackc.low %vm6188_vm14, %vm6188_vm14  ;;  %v6218_v62 = vsel %vm1657_vm15, 65537, %v7945_v55  ;;  %v1342_v8 = vand.u32 15, %v1222_v51  ;;  %vm6262_vm15 = vcmp.ne.s32.totalorder %v1300_v1, 0  ;;  %v1377_v32 = vand.u32 15, %v1227_v9 }
  0x47   : > { %5324 = vmatmul.mubr.bf16.gmra.mrb[12].mxu1 %v604_v11  ;;  %v6237_v12 = vsel %vm1838_vm4, 65537, %v7945_v55  ;;  %vm1661_vm12 = vmpackc.low %vm6220_vm7, %vm6220_vm7  ;;  %v1328_v27 = vand.u32 15, %v1220_v2  ;;  %v1230_v33 = vadd.s32 176, %v6139_v29  ;;  %v1370_v36 = vand.u32 15, %v1226_v15 }
  0x48   : > { %5327 = vmatprep.mubr.bf16.mxu1 %v605_v50  ;;  %v1293_v50 = vand.u32 15, %v1215_v42  ;;  %vm6272_vm4 = vcmp.ne.s32.totalorder %v1342_v8, 0  ;;  %v1231_v37 = vadd.s32 184, %v6139_v29  ;;  %v1229_v42 = vadd.s32 168, %v6139_v29 }
  0x49   : > { %4900 = vmatpush3.bf16.msra.mxu1 %v5699_v14  ;;  %5356 = vmatpush3.bf16.msra.mxu0 %v5703_v20  ;;  %v1349_v14 = vand.u32 15, %v1223_v56  ;;  %v1335_v20 = vand.u32 15, %v1221_v61  ;;  %v6315_v43 = vsel %vm1661_vm12, 65537, %v7945_v55  ;;  %v1228_v47 = vadd.s32 160, %v6139_v29 }
  0x4a   : > { %4901 = vmatprep.subr.bf16.mxu1 %v5701_v16  ;;  %5357 = vmatprep.subr.bf16.mxu0 %v5704_v21  ;;  %vm6202_vm3 = vcmp.ne.s32.totalorder %v1293_v50, 15  ;;  %vm6336_vm12 = vcmp.ne.s32.totalorder %v1377_v32, 15  ;;  %v1398_v11 = vand.u32 15, %v1230_v33  ;;  %v1235_v50 = vadd.s32 216, %v6139_v29 }
  0x4b   : > { %vm1663_vm8 = vmpackc.low %vm6202_vm3, %vm6202_vm3  ;;  %vm6288_vm0 = vcmp.ne.s32.totalorder %v1349_v14, 15  ;;  %v1234_v56 = vadd.s32 208, %v6139_v29  ;;  %v1233_v0 = vadd.s32 200, %v6139_v29  ;;  %v1232_v8 = vadd.s32 192, %v6139_v29 }
  0x4c   : > { %v6283_v34 = vsel %vm1663_vm8, 65537, %v7945_v55  ;;  %vm6304_vm8 = vcmp.ne.s32.totalorder %v1335_v20, 15  ;;  %vm6384_vm3 = vcmp.ne.s32.totalorder %v1398_v11, 0  ;;  %v1433_v61 = vand.u32 15, %v1235_v50 }
  0x4d   : > { %4902 = vmatpush3.bf16.msra.mxu1 %v5702_v17  ;;  %5358 = vmatpush3.bf16.msra.mxu0 %v5704_v21  ;;  %v1225_v21 = vadd.s32 136, %v6139_v29  ;;  %v1239_v25 = vadd.s32 248, %v6139_v29  ;;  %v1419_v32 = vand.u32 15, %v1233_v0  ;;  %v1238_v11 = vadd.s32 240, %v6139_v29 }
  0x4e   : > { %5023 = vmatprep.subr.bf16.mxu0 %v5705_v24 }
  0x4f   : > { %5328 = vmatmul.mubr.bf16.gmra.mrb[16].mxu1 %v606_v63  ;;  %v1218_v63 = vadd.s32 80, %v6139_v29  ;;  %v1363_v41 = vand.u32 15, %v1225_v21  ;;  %v1426_v21 = vand.u32 15, %v1234_v56  ;;  %v1461_v50 = vand.u32 15, %v1239_v25 }
  0x50   : > { %5331 = vmatprep.mubr.bf16.mxu1 %v607_v4  ;;  %v6178_v4 = vsel %vm1659_vm10, 65537, %v7945_v55  ;;  %v1454_v20 = vand.u32 15, %v1238_v11 }
  0x51   : > { %v1314_v54 = vand.u32 15, %v1218_v63 }
  0x53   : > { %vm6242_vm11 = vcmp.ne.s32.totalorder %v1314_v54, 0  ;;  %v1384_v54 = vand.u32 15, %v1228_v47 }
  0x57   : > { %5332 = vmatmul.mubr.bf16.gmra.mrb[20].mxu1 %v608_v18 }
  0x58   : > { %5335 = vmatprep.mubr.bf16.mxu1 %v609_v6  ;;  %v1272_v6 = vand.u32 15, %v1212_v45 }
  0x5a   : > { %vm6212_vm6 = vcmp.ne.s32.totalorder %v1272_v6, 0 }
  0x5b   : > { %vm1836_vm10 = vmpackc.low %vm6212_vm6, %vm6212_vm6  ;;  %vm6354_vm6 = vcmp.ne.s32.totalorder %v1370_v36, 0 }
  0x5c   : > { %v6299_v38 = vsel %vm1836_vm10, 65537, %v7945_v55  ;;  %vm6320_vm10 = vcmp.ne.s32.totalorder %v1328_v27, 0 }
  0x5f   : > { %5336 = vmatmul.mubr.bf16.gmra.mrb[24].mxu1 %v610_v19  ;;  %v1217_v19 = vadd.s32 72, %v6139_v29 }
  0x60   : > { %5339 = vmatprep.mubr.bf16.mxu1 %v611_v46  ;;  %v5721_v46 = vld [vmem:[%s7941_s6 + $0x1c0] sm:$0xff]  }
  0x61   : > { %5159 = vmatprep.subr.bf16.mxu1 %v5721_v46  ;;  %v1307_v59 = vand.u32 15, %v1217_v19  ;;  %v1356_v46 = vand.u32 15, %v1224_v28  ;;  %v1405_v19 = vand.u32 15, %v1231_v37  ;;  %v1412_v37 = vand.u32 15, %v1232_v8 }
  0x63   : > { %vm6252_vm13 = vcmp.ne.s32.totalorder %v1307_v59, 15  ;;  %vm6374_vm7 = vcmp.ne.s32.totalorder %v1356_v46, 0  ;;  %vm6408_vm2 = vcmp.ne.s32.totalorder %v1405_v19, 15  ;;  %v6527_v19 = vld [vmem:[%s7940_s5] ss:$0 sm:$0xff] }
  0x64   : > { %vm1665_vm1 = vmpackc.low %vm6252_vm13, %vm6252_vm13  ;;  %v2335_v46 = vld [vmem:[#allocation4 + $0x10] sm:$0x80] }
  0x65   : > { %v6395_v1 = vsel %vm1665_vm1, 65537, %v7945_v55  ;;  %vm8004_vm1 = vmpackc.low %vm6288_vm0, %vm6288_vm0 }
  0x66   : > { %v6419_v9 = vsel %vm8004_vm1, 65537, %v7945_v55  ;;  %vm8005_vm13 = vmpackc.low %vm6272_vm4, %vm6272_vm4  ;;  %vm6455_vm1 = vcmp.ne.s32.totalorder %v1384_v54, 0 }
  0x67   : > { %5340 = vmatmul.mubr.bf16.gmra.mrb[28].mxu1 %v612_v49  ;;  %v6170_v49 = vsel %vm1656_vm9, 65537, %v7945_v55  ;;  %vm6231_vm9 = vcmp.ne.s32.totalorder %v1321_v44, 15  ;;  %v1391_v44 = vand.u32 15, %v1229_v42  ;;  %v6427_v13 = vsel %vm8005_vm13, 65537, %v7945_v55  ;;  %vm1848_vm0 = vmpackc.low %vm6374_vm7, %vm6374_vm7 }
  0x68   : > { %v4422_v52 = vcombine.low %v6170_v49, %v6178_v4  ;;  %v4438_v57 = vcombine.low %v6186_v22, %v6170_v49  ;;  %v4421_v16 = vcombine.low %v6170_v49, %v6218_v62  ;;  %v4437_v24 = vcombine.low %v6226_v3, %v6170_v49  ;;  %vm1667_vm14 = vmpackc.low %vm6231_vm9, %vm6231_vm9 }
  0x69   : > { %v4440_v30 = vcombine.low %v6237_v12, %v6170_v49  ;;  %v6331_v5 = vsel %vm1667_vm14, 65537, %v7945_v55  ;;  %v4424_v63 = vcombine.low %v6170_v49, %v6283_v34  ;;  %vm7992_vm9 = vmpackc.low %vm6242_vm11, %vm6242_vm11  ;;  %v4423_v23 = vcombine.low %v6170_v49, %v6315_v43 }
  0x6a   : > { %v6349_v18 = vsel %vm7992_vm9, 65537, %v7945_v55  ;;  %v4439_v26 = vcombine.low %v6299_v38, %v6170_v49  ;;  %vm6365_vm9 = vcmp.ne.s32.totalorder %v1363_v41, 15  ;;  %v4426_v51 = vcombine.low %v6170_v49, %v6331_v5  ;;  %vm8001_vm11 = vmpackc.low %vm6262_vm15, %vm6262_vm15 }
  0x6b   : > { %v4442_v58 = vcombine.low %v6349_v18, %v6170_v49  ;;  %v6403_v2 = vsel %vm8001_vm11, 65537, %v7945_v55  ;;  %vm1673_vm14 = vmpackc.low %vm6365_vm9, %vm6365_vm9  ;;  %vm6440_vm11 = vcmp.ne.s32.totalorder %v1391_v44, 15  ;;  %vm6519_vm9 = vcmp.ne.s32.totalorder %v1426_v21, 0 }
  0x6c   : > { %vm8006_vm15 = vmpackc.low %vm6304_vm8, %vm6304_vm8  ;;  %v6493_v36 = vsel %vm1673_vm14, 65537, %v7945_v55  ;;  %v6553_v4 = vsel %vm1848_vm0, 65537, %v7945_v55  ;;  %vm6555_vm14 = vcmp.ne.s32.totalorder %v1419_v32, 15  ;;  %vm6576_vm7 = vcmp.ne.s32.totalorder %v1412_v37, 0 }
  0x6d   : > { %v6435_v14 = vsel %vm8006_vm15, 65537, %v7945_v55  ;;  %vm8009_vm4 = vmpackc.low %vm6320_vm10, %vm6320_vm10  ;;  %vm6473_vm15 = vcmp.ne.s32.totalorder %v1433_v61, 15  ;;  %v6677_v22 = vadd.s32 224, %v6139_v29 }
  0x6e   : > { %v6450_v17 = vsel %vm8009_vm4, 65537, %v7945_v55  ;;  %vm1854_vm8 = vmpackc.low %vm6384_vm3, %vm6384_vm3  ;;  %vm6591_vm3 = vcmp.ne.s16.totalorder %v4437_v24, 0 }
  0x6f   : > { %vm8012_vm10 = vmpackc.low %vm6336_vm12, %vm6336_vm12  ;;  %v6574_v53 = vsel %vm1854_vm8, 65537, %v7945_v55 }
  0x70   : > { %v6468_v28 = vsel %vm8012_vm10, 65537, %v7945_v55  ;;  %vm1679_vm13 = vmpackc.low %vm6408_vm2, %vm6408_vm2  ;;  %vm6532_vm10 = vcmp.ne.s16.totalorder %v4422_v52, 0  ;;  %vm6584_vm2 = vcmp.ne.s16.totalorder %v4421_v16, 0 }
  0x71   : > { %vm8015_vm12 = vmpackc.low %vm6354_vm6, %vm6354_vm6  ;;  %v6566_v61 = vsel %vm1679_vm13, 65537, %v7945_v55 }
  0x72   : > { %v6485_v35 = vsel %vm8015_vm12, 65537, %v7945_v55  ;;  %vm1677_vm4 = vmpackc.low %vm6440_vm11, %vm6440_vm11  ;;  %vm6539_vm12 = vcmp.ne.s16.totalorder %v4438_v57, 0 }
  0x73   : > { %vm1852_vm6 = vmpackc.low %vm6455_vm1, %vm6455_vm1  ;;  %v6601_v25 = vsel %vm1677_vm4, 65537, %v7945_v55  ;;  %vm6627_vm1 = vcmp.ne.s32.totalorder %v1461_v50, 15  ;;  %vm2151_vm4 = vsmask.f32 7938 }
  0x74   : > { %v6609_v62 = vsel %vm1852_vm6, 65537, %v7945_v55  ;;  %vm8030_vm0 = vmpackc.low %vm6473_vm15, %vm6473_vm15  ;;  %vm2150_vm15 = vcmask 1047552  }
  0x75   : > { %v6617_v3 = vsel %vm8030_vm0, 65537, %v7945_v55  ;;  %vm1858_vm11 = vmpackc.low %vm6519_vm9, %vm6519_vm9  ;;  %vm6672_vm9 = vcmp.ne.s32.totalorder %v1454_v20, 0  ;;  %vm6703_vm0 = vcmp.ne.s16.totalorder %v4440_v30, 0 }
  0x76   : > { %vm1681_vm8 = vmpackc.low %vm6555_vm14, %vm6555_vm14  ;;  %vm2190_vm14 = vsmask.f32 7424 }
  0x77   : > { %vm1856_vm13 = vmpackc.low %vm6576_vm7, %vm6576_vm7  ;;  %vm6696_vm7 = vcmp.ne.s16.totalorder %v4424_v63, 0 }
  0x78   : > { %vm1687_vm6 = vmpackc.low %vm6627_vm1, %vm6627_vm1  ;;  %vm6789_vm1 = vcmp.ne.s16.totalorder %v4442_v58, 0 }
  0x79   : > { %v6688_v56 = vsel %vm1687_vm6, 65537, %v7945_v55 }
 0x102   : > { %v5313_v6 = vpop.f32.mrb[0].mxu1 }
 0x103   : > { %v1090_v52 = vmul.f32 %v5313_v6, %v6501_v40  ;;  %v711_v57 = vpop.f32.mrb[1].mxu1  ;;  %v6680_v6 = vadd.s32 232, %v6139_v29  ;;  %v5708_v29 = vld [vmem:[%s7941_s6 + $0x8] sm:$0xff]  }
 0x104   : > { %v1088_v8 = vmul.f32 %v6501_v40, %v711_v57  ;;  %v5314_v21 = vpop.f32.mrb[2].mxu1 }
 0x105   : > { %v1129_v16 = vadd.f32 %v6527_v19, %v1090_v52  ;;  %v1091_v24 = vmul.f32 %v5314_v21, %v6501_v40  ;;  %v714_v15 = vpop.f32.mrb[3].mxu1  ;;  %v1447_v44 = vand.u32 15, %v6680_v6 }
 0x106   : > { %v1127_v31 = vadd.f32 %v6527_v19, %v1088_v8  ;;  %v1089_v37 = vmul.f32 %v6501_v40, %v714_v15  ;;  %v6664_v15 = vsel %vm1681_vm8, 65537, %v7945_v55  ;;  %v6670_v8 = vsel %vm1856_vm13, 65537, %v7945_v55 }
 0x107   : > { %v1130_v11 = vadd.f32 %v6527_v19, %v1091_v24  ;;  %v6656_v24 = vsel %vm1858_vm11, 65537, %v7945_v55  ;;  %vm1862_vm11 = vmpackc.low %vm6672_vm9, %vm6672_vm9  ;;  %vm6782_vm8 = vcmp.ne.s16.totalorder %v4426_v51, 0  ;;  %v5722_v51 = vld [vmem:[%s7941_s6 + $0x180] sm:$0xff]  }
 0x108   : > { %v1128_v21 = vadd.f32 %v6527_v19, %v1089_v37  ;;  %v1161_v37 = vmax.f32 %v1129_v16, 0.0  ;;  %v1159_v57 = vmax.f32 %v1127_v31, 0.0  ;;  %v6743_v39 = vsel %vm1862_vm11, 65537, %v7945_v55 }
 0x109   : > { %v1162_v0 = vmax.f32 %v1130_v11, 0.0 }
 0x10a   : > { %v1160_v52 = vmax.f32 %v1128_v21, 0.0  ;;  %v5317_v50 = vpop.f32.mrb[4].mxu1 }
 0x10b   : > { %v6682_v32 = vpack.c.bf16 %v1162_v0, %v1161_v37  ;;  %v1094_v16 = vmul.f32 %v5317_v50, %v6501_v40  ;;  %v727_v11 = vpop.f32.mrb[5].mxu1 }
 0x10c   : > { %v6690_v31 = vpack.c.bf16 %v1160_v52, %v1159_v57  ;;  %v1092_v21 = vmul.f32 %v6501_v40, %v727_v11  ;;  %v5318_v54 = vpop.f32.mrb[6].mxu1 }
 0x10d   : > { %v1785_v34 = vsel %vm6532_vm10, %v6682_v32, 0  ;;  %v6720_v12 = vsel %vm6539_vm12, %v6682_v32, 0  ;;  %2175 = vst [vmem:[#allocation4 + $0x38] sm:$0xff] %v6682_v32  ;;  %v1133_v30 = vadd.f32 %v6527_v19, %v1094_v16  ;;  %v1095_v63 = vmul.f32 %v5318_v54, %v6501_v40  ;;  %v730_v0 = vpop.f32.mrb[7].mxu1 }
 0x10e   : > { %v2014_v37 = vshrl.u32 %v1785_v34, 16  ;;  %2174 = vst [vmem:[#allocation4 + $0x20] sm:$0xff] %v6690_v31  ;;  %2681 = vmatprep.mubr.bf16.mxu1 %v6690_v31  ;;  %v2017_v57 = vshll.u32 %v1785_v34, 16  ;;  %v1784_v16 = vsel %vm6584_vm2, %v6690_v31, 0  ;;  %v1960_v54 = vsel %vm6591_vm3, %v6690_v31, 0  ;;  %vm6769_vm2 = vmand %vm2150_vm15, %vm2151_vm4 }
 0x10f   : > { %v2199_v6 = vshll.u32 %v6720_v12, 16  ;;  %v2203_v34 = vshrl.u32 %v6720_v12, 16  ;;  %v2007_v7 = vshrl.u32 %v1784_v16, 16  ;;  %vm6752_vm10 = vcmp.ne.s16.totalorder %v4423_v23, 0 }
 0x110   : > { %v6745_v11 = vrot.slane %v2014_v37, 7  ;;  %vm6759_vm12 = vcmp.ne.s16.totalorder %v4439_v26, 0  ;;  %v2192_v37 = vshll.u32 %v1960_v54, 16  ;;  %v1165_v52 = vmax.f32 %v1133_v30, 0.0  ;;  %v2153_v26 = vld [vmem:[#allocation4 + $0x18] sm:$0xff] }
 0x111   : > { %v1131_v20 = vadd.f32 %v6527_v19, %v1092_v21  ;;  %v1134_v12 = vadd.f32 %v6527_v19, %v1095_v63  ;;  %v2009_v43 = vrot.slane %v2007_v7, 7  ;;  %v2010_v23 = vshll.u32 %v1784_v16, 16 }
 0x112   : > { %v2019_v47 = vor.u32 %v2017_v57, %v6745_v11  ;;  %v1093_v45 = vmul.f32 %v6501_v40, %v730_v0  ;;  %v5321_v55 = vpop.f32.mrb[8].mxu1  ;;  %v2194_v30 = vrot.slane %v2192_v37, 1  ;;  %v2195_v42 = vshrl.u32 %v1960_v54, 16 }
 0x113   : > { %v1166_v21 = vmax.f32 %v1134_v12, 0.0  ;;  %v1098_v63 = vmul.f32 %v5321_v55, %v6501_v40  ;;  %v743_v41 = vpop.f32.mrb[9].mxu1  ;;  %v2012_v57 = vor.u32 %v2010_v23, %v2009_v43  ;;  %vm8045_vm3 = vsmask.f32 256 }
 0x114   : > { %v6775_v16 = vsel %vm8045_vm3, %v2009_v43, %v2019_v47  ;;  %v1132_v0 = vadd.f32 %v6527_v19, %v1093_v45  ;;  %v1096_v7 = vmul.f32 %v6501_v40, %v743_v41  ;;  %v5322_v33 = vpop.f32.mrb[10].mxu1  ;;  %v2201_v47 = vrot.slane %v2199_v6, 1  ;;  %vm8058_vm6 = vmmov %vm8045_vm3 }
 0x115   : > { %2156 = vst [vmem:[#allocation4 + $0x30] sm:$0xff] %v6775_v16  ;;  %v2197_v45 = vor.u32 %v2195_v42, %v2194_v30  ;;  %v2336_v41 = vsel %vm6110_vm5, %v2194_v30, %v2335_v46  ;;  %v6796_v54 = vpack.c.bf16 %v1166_v21, %v1165_v52  ;;  %v746_v5 = vpop.f32.mrb[11].mxu1  ;;  %v6803_v18 = vsel %vm6769_vm2, %v2012_v57, %v2153_v26  ;;  %vm8066_vm11 = vmmov %vm8045_vm3 }
 0x116   : > { %2337 = vst [vmem:[#allocation4 + $0x10] sm:$0x80] %v2336_v41  ;;  %v1164_v58 = vmax.f32 %v1132_v0, 0.0  ;;  %v1137_v6 = vadd.f32 %v6527_v19, %v1098_v63  ;;  %v1099_v42 = vmul.f32 %v5322_v33, %v6501_v40  ;;  %2155 = vst [vmem:[#allocation4 + $0x18] sm:$0xff] %v6803_v18  ;;  %v1163_v52 = vmax.f32 %v1131_v20, 0.0  ;;  %2682 = vmatmul.mubr.bf16.vlgmr.msra.gmra.mrb[32].mxu1 %v6803_v18  ;;  %v5725_v63 = vld [vmem:[%s7941_s6 + $0x188] sm:$0xff]  }
 0x117   : > { %v2202_v46 = vsel %vm2190_vm14, %v2197_v45, %v2201_v47  ;;  %v1787_v37 = vsel %vm6696_vm7, %v6796_v54, 0  ;;  %v6818_v12 = vsel %vm6703_vm0, %v6796_v54, 0  ;;  %2177 = vst [vmem:[#allocation4 + $0x68] sm:$0xff] %v6796_v54  ;;  %v8050_v33 = vcombine.low %v6170_v49, %v6395_v1  ;;  %2689 = vmatprep.mubr.bf16.mxu1 %v6682_v32  ;;  %5160 = vmatpush3.bf16.msra.mxu1 %v5722_v51 }
 0x118   : > { %v8053_v20 = vcombine.low %v6403_v2, %v6170_v49  ;;  %2338 = vst [vmem:[#allocation4 + $0x28] sm:$0xff] %v2202_v46  ;;  %v2030_v50 = vshrl.u32 %v1787_v37, 16  ;;  %v2215_v23 = vshll.u32 %v6818_v12, 16  ;;  %v1135_v38 = vadd.f32 %v6527_v19, %v1096_v7  ;;  %5359 = vmatprep.mubr.bf16.mxu0 %v2202_v46  ;;  %5161 = vmatprep.subr.bf16.mxu1 %v5724_v10 }
 0x119   : > { %vm6824_vm5 = vcmp.ne.s16.totalorder %v8050_v33, 0  ;;  %vm6839_vm4 = vcmp.ne.s32.totalorder %v1447_v44, 15  ;;  %v2205_v2 = vor.u32 %v2203_v34, %v2201_v47  ;;  %v6843_v26 = vpack.c.bf16 %v1164_v58, %v1163_v52  ;;  %v5727_v34 = vld [vmem:[%s7941_s6 + $0x1d0] sm:$0xff]  }
 0x11a   : > { %vm6831_vm13 = vcmp.ne.s16.totalorder %v8053_v20, 0  ;;  %v1138_v30 = vadd.f32 %v6527_v19, %v1099_v42  ;;  %v1097_v21 = vmul.f32 %v6501_v40, %v746_v5  ;;  %v6850_v57 = vrot.slane %v2030_v50, 7  ;;  %v5325_v7 = vpop.f32.mrb[12].mxu1  ;;  %vm1685_vm0 = vmpackc.low %vm6839_vm4, %vm6839_vm4 }
 0x11b   : > { %v2033_v0 = vshll.u32 %v1787_v37, 16  ;;  %v2219_v32 = vshrl.u32 %v6818_v12, 16  ;;  %v1169_v44 = vmax.f32 %v1137_v6, 0.0  ;;  %v1786_v47 = vsel %vm6752_vm10, %v6843_v26, 0  ;;  %2176 = vst [vmem:[#allocation4 + $0x50] sm:$0xff] %v6843_v26  ;;  %v759_v51 = vpop.f32.mrb[13].mxu1  ;;  %5162 = vmatpush3.bf16.msra.mxu1 %v5725_v63 }
 0x11c   : > { %v1962_v45 = vsel %vm6759_vm12, %v6843_v26, 0  ;;  %v1170_v41 = vmax.f32 %v1138_v30, 0.0  ;;  %v1136_v5 = vadd.f32 %v6527_v19, %v1097_v21  ;;  %v2217_v6 = vrot.slane %v2215_v23, 1  ;;  %v5326_v46 = vpop.f32.mrb[14].mxu1  ;;  %5163 = vmatprep.subr.bf16.mxu1 %v5727_v34 }
 0x11d   : > { %v2035_v58 = vor.u32 %v2033_v0, %v6850_v57  ;;  %v2022_v42 = vshrl.u32 %v1786_v47, 16  ;;  %v1167_v10 = vmax.f32 %v1135_v38, 0.0  ;;  %v2025_v52 = vshll.u32 %v1786_v47, 16  ;;  %v6865_v33 = vpop.f32.mrb[15].mxu1  ;;  %v5730_v38 = vld [vmem:[%s7941_s6 + $0x1d8] sm:$0xff]  }
 0x11e   : > { %v2207_v37 = vshll.u32 %v1962_v45, 16  ;;  %v1196_v59 = vpack.c.bf16 %v1170_v41, %v1169_v44  ;;  %v1168_v12 = vmax.f32 %v1136_v5, 0.0  ;;  %v2211_v50 = vshrl.u32 %v1962_v45, 16  ;;  %2690 = vmatmul.mubr.bf16.gmra.mrb[36].mxu1 %v6775_v16 }
 0x11f   : > { %v2024_v20 = vrot.slane %v2022_v42, 7  ;;  %v1102_v30 = vmul.f32 %v5325_v7, %v6501_v40  ;;  %v1100_v23 = vmul.f32 %v6501_v40, %v759_v51  ;;  %v5706_v7 = vld [vmem:[%s7941_s6] sm:$0xff]   ;;  %v1103_v27 = vmul.f32 %v5326_v46, %v6501_v40  ;;  %2697 = vmatprep.mubr.bf16.mxu1 %v6843_v26  ;;  %5164 = vmatpush3.bf16.msra.mxu1 %v5728_v48  ;;  %v5731_v46 = vld [vmem:[%s7941_s6 + $0x198] sm:$0xff]  }
 0x120   : > { %v2209_v21 = vrot.slane %v2207_v37, 1  ;;  %v1789_v0 = vsel %vm6782_vm8, %v1196_v59, 0  ;;  %v6879_v63 = vsel %vm6789_vm1, %v1196_v59, 0  ;;  %2179 = vst [vmem:[#allocation4 + $0x98] sm:$0xff] %v1196_v59  ;;  %v6881_v44 = vpack.c.bf16 %v1168_v12, %v1167_v10  ;;  %5165 = vmatprep.subr.bf16.mxu1 %v5730_v38  ;;  %vm8081_vm8 = vmmov %vm8058_vm6 }
 0x121   : > { %v2027_v34 = vor.u32 %v2025_v52, %v2024_v20  ;;  %v6888_v47 = vsel %vm8058_vm6, %v2024_v20, %v2035_v58  ;;  %v2046_v45 = vshrl.u32 %v1789_v0, 16  ;;  %v8059_v55 = vcombine.low %v6170_v49, %v6419_v9  ;;  %v5707_v58 = vld [vmem:[%s7941_s6 + $0x48] sm:$0xff]   ;;  %vm8083_vm1 = vmmov %vm8058_vm6 }
 0x122   : > { %v8062_v5 = vcombine.low %v6427_v13, %v6170_v49  ;;  %2158 = vst [vmem:[#allocation4 + $0x60] sm:$0xff] %v6888_v47  ;;  %v6914_v9 = vsel %vm2190_vm14, %v2205_v2, %v2209_v21  ;;  %v2213_v13 = vor.u32 %v2211_v50, %v2209_v21  ;;  %v2049_v42 = vshll.u32 %v1789_v0, 16  ;;  %2178 = vst [vmem:[#allocation4 + $0x80] sm:$0xff] %v6881_v44  ;;  %v5329_v12 = vpop.f32.mrb[16].mxu1 }
 0x123   : > { %vm6894_vm9 = vcmp.ne.s16.totalorder %v8059_v55, 0  ;;  %8065 = vst [vmem:[#allocation5_spill] sm:$0xff] %v6914_v9  ;;  %v2231_v10 = vshll.u32 %v6879_v63, 16  ;;  %v6923_v52 = vsel %vm8066_vm11, %v6745_v11, %v2027_v34  ;;  %2339 = vst [vmem:[#allocation4 + $0x40] sm:$0xff] %v6914_v9  ;;  %v6926_v37 = vrot.slane %v2046_v45, 7  ;;  %5360 = vmatmul.mubr.bf16.vlgmr.msra.gmra.mrb[0].mxu0 %v6914_v9  ;;  %v5732_v11 = vld [vmem:[%s7941_s6 + $0x1e0] sm:$0xff]   ;;  %5166 = vmatpush3.bf16.msra.mxu1 %v5731_v46 }
 0x124   : > { %vm6901_vm7 = vcmp.ne.s16.totalorder %v8062_v5, 0  ;;  %v1788_v2 = vsel %vm6824_vm5, %v6881_v44, 0  ;;  %v1964_v59 = vsel %vm6831_vm13, %v6881_v44, 0  ;;  %v2221_v48 = vor.u32 %v2219_v32, %v2217_v6  ;;  %2157 = vst [vmem:[#allocation4 + $0x48] sm:$0xff] %v6923_v52  ;;  %v775_v50 = vpop.f32.mrb[17].mxu1  ;;  %5024 = vmatpush3.bf16.msra.mxu0 %v5706_v7  ;;  %5167 = vmatprep.subr.bf16.mxu1 %v5732_v11  ;;  %v5739_v45 = vld [vmem:[%s7941_s6 + $0x1f8] sm:$0xff]   ;;  %vm8091_vm4 = vmmov %vm8083_vm1 }
 0x125   : > { %v6940_v20 = vsel %vm2190_vm14, %v2213_v13, %v2217_v6  ;;  %v2038_v43 = vshrl.u32 %v1788_v2, 16  ;;  %v8068_v21 = vmov 0   ;;  %v2051_v32 = vor.u32 %v2049_v42, %v6926_v37  ;;  %v5330_v5 = vpop.f32.mrb[18].mxu1  ;;  %5025 = vmatprep.subr.bf16.mxu0 %v5707_v58 }
 0x126   : > { %8067 = vst [vmem:[#allocation6_spill] sm:$0xff] %v6940_v20  ;;  %v6951_v38 = vsel %vm1685_vm0, 65537, %v8068_v21  ;;  %2340 = vst [vmem:[#allocation4 + $0x58] sm:$0xff] %v6940_v20  ;;  %v6955_v6 = vrot.slane %v2231_v10, 1  ;;  %v2223_v0 = vshll.u32 %v1964_v59, 16  ;;  %v1141_v7 = vadd.f32 %v6527_v19, %v1102_v30  ;;  %5363 = vmatprep.mubr.bf16.mxu0 %v6940_v20  ;;  %v778_v10 = vpop.f32.mrb[19].mxu1  ;;  %2698 = vmatmul.mubr.bf16.gmra.mrb[40].mxu1 %v6923_v52 }
 0x127   : > { %v8069_v34 = vcombine.low %v6170_v49, %v6435_v14  ;;  %v8072_v1 = vcombine.low %v6450_v17, %v6170_v49  ;;  %v2040_v13 = vrot.slane %v2038_v43, 7  ;;  %v2041_v30 = vshll.u32 %v1788_v2, 16  ;;  %v5709_v21 = vld [vmem:[%s7941_s6 + $0x50] sm:$0xff]   ;;  %2705 = vmatprep.mubr.bf16.mxu1 %v6796_v54  ;;  %v5740_v2 = vld [vmem:[%s7941_s6 + $0x1b8] sm:$0xff]  }
 0x128   : > { %v2227_v42 = vshrl.u32 %v1964_v59, 16  ;;  %v1142_v14 = vadd.f32 %v6527_v19, %v1103_v27  ;;  %v2225_v17 = vrot.slane %v2223_v0, 1  ;;  %v1106_v20 = vmul.f32 %v5329_v12, %v6501_v40  ;;  %5026 = vmatpush3.bf16.msra.mxu0 %v5708_v29  ;;  %v5711_v29 = vld [vmem:[%s7941_s6 + $0x58] sm:$0xff]  }
 0x129   : > { %vm6961_vm10 = vcmp.ne.s16.totalorder %v8069_v34, 0  ;;  %vm6968_vm12 = vcmp.ne.s16.totalorder %v8072_v1, 0  ;;  %v1139_v34 = vadd.f32 %v6527_v19, %v1100_v23  ;;  %v1101_v1 = vmul.f32 %v6501_v40, %v6865_v33  ;;  %v5733_v33 = vld [vmem:[%s7941_s6 + $0x1a0] sm:$0xff]   ;;  %5027 = vmatprep.subr.bf16.mxu0 %v5709_v21 }
 0x12a   : > { %v8075_v58 = vcombine.low %v6170_v49, %v6468_v28  ;;  %v8078_v27 = vcombine.low %v6485_v35, %v6170_v49  ;;  %v2043_v23 = vor.u32 %v2041_v30, %v2040_v13  ;;  %v2052_v59 = vsel %vm8081_vm8, %v2040_v13, %v2051_v32  ;;  %v5710_v35 = vld [vmem:[%s7941_s6 + $0x10] sm:$0xff]   ;;  %v5734_v32 = vld [vmem:[%s7941_s6 + $0x1e8] sm:$0xff]   ;;  %5168 = vmatpush3.bf16.msra.mxu1 %v5733_v33 }
 0x12b   : > { %v1173_v28 = vmax.f32 %v1141_v7, 0.0  ;;  %v1174_v12 = vmax.f32 %v1142_v14, 0.0  ;;  %2160 = vst [vmem:[#allocation4 + $0x90] sm:$0xff] %v2052_v59  ;;  %v7004_v43 = vsel %vm2190_vm14, %v2221_v48, %v2225_v17  ;;  %v2229_v11 = vor.u32 %v2227_v42, %v2225_v17  ;;  %5169 = vmatprep.subr.bf16.mxu1 %v5734_v32 }
 0x12c   : > { %vm6984_vm2 = vcmp.ne.s16.totalorder %v8075_v58, 0  ;;  %vm6991_vm3 = vcmp.ne.s16.totalorder %v8078_v27, 0  ;;  %8082 = vst [vmem:[#allocation7_spill] sm:$0xff] %v7004_v43  ;;  %v1140_v0 = vadd.f32 %v6527_v19, %v1101_v1  ;;  %v1145_v30 = vadd.f32 %v6527_v19, %v1106_v20  ;;  %2341 = vst [vmem:[#allocation4 + $0x70] sm:$0xff] %v7004_v43  ;;  %5364 = vmatmul.mubr.bf16.gmra.mrb[4].mxu0 %v7004_v43 }
 0x12d   : > { %v7017_v7 = vsel %vm8083_vm1, %v6850_v57, %v2043_v23  ;;  %v7020_v48 = vpack.c.bf16 %v1174_v12, %v1173_v28  ;;  %v1104_v20 = vmul.f32 %v6501_v40, %v775_v50  ;;  %v1107_v13 = vmul.f32 %v5330_v5, %v6501_v40  ;;  %v5333_v5 = vpop.f32.mrb[20].mxu1  ;;  %5028 = vmatpush3.bf16.msra.mxu0 %v5710_v35  ;;  %v5713_v12 = vld [vmem:[%s7941_s6 + $0x60] sm:$0xff]  }
 0x12e   : > { %v2235_v42 = vshrl.u32 %v6879_v63, 16  ;;  %2159 = vst [vmem:[#allocation4 + $0x78] sm:$0xff] %v7017_v7  ;;  %v7028_v14 = vsel %vm2190_vm14, %v2229_v11, %v6955_v6  ;;  %v1172_v17 = vmax.f32 %v1140_v0, 0.0  ;;  %v1105_v57 = vmul.f32 %v6501_v40, %v778_v10  ;;  %v5736_v10 = vld [vmem:[%s7941_s6 + $0x1a8] sm:$0xff]   ;;  %v791_v33 = vpop.f32.mrb[21].mxu1  ;;  %5029 = vmatprep.subr.bf16.mxu0 %v5711_v29  ;;  %2706 = vmatmul.mubr.bf16.gmra.mrb[44].mxu1 %v6888_v47  ;;  %v5717_v63 = vld [vmem:[%s7941_s6 + $0x70] sm:$0xff]  }
 0x12f   : > { %8084 = vst [vmem:[#allocation8_spill] sm:$0xff] %v7028_v14  ;;  %v8085_v1 = vcombine.low %v6170_v49, %v6493_v36  ;;  %v8088_v50 = vcombine.low %v6553_v4, %v6170_v49  ;;  %2342 = vst [vmem:[#allocation4 + $0x88] sm:$0xff] %v7028_v14  ;;  %v1171_v36 = vmax.f32 %v1139_v34, 0.0  ;;  %v1791_v21 = vsel %vm6894_vm9, %v7020_v48, 0  ;;  %5367 = vmatprep.mubr.bf16.mxu0 %v7028_v14  ;;  %v5712_v34 = vld [vmem:[%s7941_s6 + $0x18] sm:$0xff]   ;;  %v7066_v28 = vpop.f32.mrb[22].mxu1 }
 0x130   : > { %v1967_v4 = vsel %vm6901_vm7, %v7020_v48, 0  ;;  %2181 = vst [vmem:[#allocation4 + $0xc8] sm:$0xff] %v7020_v48  ;;  %v1146_v27 = vadd.f32 %v6527_v19, %v1107_v13  ;;  %v7063_v23 = vor.u32 %v2235_v42, %v6955_v6  ;;  %v2062_v41 = vshrl.u32 %v1791_v21, 16  ;;  %v7074_v6 = vpop.f32.mrb[23].mxu1  ;;  %5170 = vmatpush3.bf16.msra.mxu1 %v5736_v10  ;;  %v5714_v10 = vld [vmem:[%s7941_s6 + $0x20] sm:$0xff]   ;;  %2713 = vmatprep.mubr.bf16.mxu1 %v6881_v44  ;;  %vm8098_vm7 = vmmov %vm8083_vm1 }
 0x131   : > { %vm7034_vm5 = vcmp.ne.s16.totalorder %v8085_v1, 0  ;;  %vm7041_vm13 = vcmp.ne.s16.totalorder %v8088_v50, 0  ;;  %v2247_v59 = vshll.u32 %v1967_v4, 16  ;;  %v1143_v51 = vadd.f32 %v6527_v19, %v1104_v20  ;;  %v5737_v20 = vld [vmem:[%s7941_s6 + $0x1f0] sm:$0xff]   ;;  %5030 = vmatpush3.bf16.msra.mxu0 %v5712_v34  ;;  %v5715_v34 = vld [vmem:[%s7941_s6 + $0x68] sm:$0xff]  }
 0x132   : > { %v7071_v35 = vpack.c.bf16 %v1172_v17, %v1171_v36  ;;  %v1177_v11 = vmax.f32 %v1145_v30, 0.0  ;;  %v1178_v0 = vmax.f32 %v1146_v27, 0.0  ;;  %v1144_v13 = vadd.f32 %v6527_v19, %v1105_v57  ;;  %v5738_v30 = vld [vmem:[%s7941_s6 + $0x1b0] sm:$0xff]   ;;  %5031 = vmatprep.subr.bf16.mxu0 %v5713_v12  ;;  %5171 = vmatprep.subr.bf16.mxu1 %v5737_v20  ;;  %v5716_v20 = vld [vmem:[%s7941_s6 + $0x28] sm:$0xff]  }
 0x133   : > { %v7079_v42 = vrot.slane %v2062_v41, 7  ;;  %v2065_v29 = vshll.u32 %v1791_v21, 16  ;;  %v7081_v1 = vrot.slane %v2247_v59, 1  ;;  %v2251_v50 = vshrl.u32 %v1967_v4, 16 }
 0x134   : > { %v1790_v32 = vsel %vm6961_vm10, %v7071_v35, 0  ;;  %v1966_v17 = vsel %vm6968_vm12, %v7071_v35, 0  ;;  %2180 = vst [vmem:[#allocation4 + $0xb0] sm:$0xff] %v7071_v35  ;;  %v7093_v57 = vpack.c.bf16 %v1178_v0, %v1177_v11  ;;  %v1176_v36 = vmax.f32 %v1144_v13, 0.0  ;;  %5172 = vmatpush3.bf16.msra.mxu1 %v5738_v30  ;;  %vm8109_vm12 = vmmov %vm8083_vm1 }
 0x135   : > { %v2067_v21 = vor.u32 %v2065_v29, %v7079_v42  ;;  %v2054_v55 = vshrl.u32 %v1790_v32, 16  ;;  %v1175_v4 = vmax.f32 %v1143_v51, 0.0  ;;  %v1110_v27 = vmul.f32 %v5333_v5, %v6501_v40  ;;  %v5337_v29 = vpop.f32.mrb[24].mxu1  ;;  %5032 = vmatpush3.bf16.msra.mxu0 %v5714_v10  ;;  %5173 = vmatprep.subr.bf16.mxu1 %v5739_v45 }
 0x136   : > { %v2239_v41 = vshll.u32 %v1966_v17, 16  ;;  %v1793_v59 = vsel %vm6984_vm2, %v7093_v57, 0  ;;  %v7114_v11 = vsel %vm6991_vm3, %v7093_v57, 0  ;;  %2183 = vst [vmem:[#allocation4 + $0xf8] sm:$0xff] %v7093_v57  ;;  %v1108_v5 = vmul.f32 %v6501_v40, %v791_v33  ;;  %v807_v33 = vpop.f32.mrb[25].mxu1  ;;  %5033 = vmatprep.subr.bf16.mxu0 %v5715_v34  ;;  %2714 = vmatmul.mubr.bf16.gmra.mrb[48].mxu1 %v7017_v7  ;;  %vm8111_vm2 = vmmov %vm8083_vm1 }
 0x137   : > { %v7119_v51 = vor.u32 %v2251_v50, %v7081_v1  ;;  %v2056_v12 = vrot.slane %v2054_v55, 7  ;;  %v2057_v0 = vshll.u32 %v1790_v32, 16  ;;  %v2078_v13 = vshrl.u32 %v1793_v59, 16 }
 0x138   : > { %v2241_v46 = vrot.slane %v2239_v41, 1  ;;  %v2243_v14 = vshrl.u32 %v1966_v17, 16  ;;  %v2263_v43 = vshll.u32 %v7114_v11, 16  ;;  %v7125_v9 = vpack.c.bf16 %v1176_v36, %v1175_v4  ;;  %v5338_v41 = vpop.f32.mrb[26].mxu1  ;;  %5174 = vmatpush3.bf16.msra.mxu1 %v5740_v2 }
 0x139   : > { %v2059_v50 = vor.u32 %v2057_v0, %v2056_v12  ;;  %v7131_v30 = vsel %vm8091_vm4, %v2056_v12, %v2067_v21  ;;  %v7133_v32 = vrot.slane %v2078_v13, 7  ;;  %v2081_v55 = vshll.u32 %v1793_v59, 16  ;;  %v810_v58 = vpop.f32.mrb[27].mxu1  ;;  %5034 = vmatpush3.bf16.msra.mxu0 %v5716_v20  ;;  %v5719_v20 = vld [vmem:[%s7941_s6 + $0x78] sm:$0xff]  }
 0x13a   : > { %2162 = vst [vmem:[#allocation4 + $0xc0] sm:$0xff] %v7131_v30  ;;  %v7138_v17 = vsel %vm2190_vm14, %v7063_v23, %v2241_v46  ;;  %v2245_v36 = vor.u32 %v2243_v14, %v2241_v46  ;;  %v1792_v10 = vsel %vm7034_vm5, %v7125_v9, 0  ;;  %v1968_v45 = vsel %vm7041_vm13, %v7125_v9, 0  ;;  %2182 = vst [vmem:[#allocation4 + $0xe0] sm:$0xff] %v7125_v9  ;;  %5035 = vmatprep.subr.bf16.mxu0 %v5717_v63 }
 0x13b   : > { %v8092_v21 = vcombine.low %v6170_v49, %v6566_v61  ;;  %v8095_v14 = vcombine.low %v6574_v53, %v6170_v49  ;;  %v7166_v34 = vsel %vm8098_vm7, %v6926_v37, %v2059_v50  ;;  %2343 = vst [vmem:[#allocation4 + $0xa0] sm:$0xff] %v7138_v17  ;;  %v2083_v61 = vor.u32 %v2081_v55, %v7133_v32  ;;  %vm8131_vm7 = vmmov %vm8111_vm2 }
 0x13c   : > { %v2070_v59 = vshrl.u32 %v1792_v10, 16  ;;  %v1149_v53 = vadd.f32 %v6527_v19, %v1110_v27  ;;  %5368 = vmatmul.mubr.bf16.gmra.mrb[8].mxu0 %v7138_v17  ;;  %2161 = vst [vmem:[#allocation4 + $0xa8] sm:$0xff] %v7166_v34  ;;  %v7175_v12 = vsel %vm2190_vm14, %v2245_v36, %v7081_v1  ;;  %v7177_v0 = vrot.slane %v2263_v43, 1  ;;  %v7194_v43 = vld [vmem:[#allocation4 + $0x98] sm:$0xff] }
 0x13d   : > { %vm7150_vm6 = vcmp.ne.s16.totalorder %v8092_v21, 0  ;;  %vm7157_vm9 = vcmp.ne.s16.totalorder %v8095_v14, 0  ;;  %8099 = vst [vmem:[#allocation9_spill] sm:$0xff] %v7175_v12  ;;  %v2073_v37 = vshll.u32 %v1792_v10, 16  ;;  %v2255_v13 = vshll.u32 %v1968_v45, 16  ;;  %2344 = vst [vmem:[#allocation4 + $0xb8] sm:$0xff] %v7175_v12  ;;  %5371 = vmatprep.mubr.bf16.mxu0 %v7175_v12  ;;  %2721 = vmatprep.mubr.bf16.mxu1 %v7194_v43 }
 0x13e   : > { %v8100_v46 = vcombine.low %v6170_v49, %v6601_v25  ;;  %v8103_v27 = vcombine.low %v6609_v62, %v6170_v49  ;;  %v5718_v25 = vld [vmem:[%s7941_s6 + $0x30] sm:$0xff]   ;;  %v2072_v1 = vrot.slane %v2070_v59, 7  ;;  %v2259_v55 = vshrl.u32 %v1968_v45, 16 }
 0x13f   : > { %v1147_v36 = vadd.f32 %v6527_v19, %v1108_v5  ;;  %v1111_v62 = vmul.f32 %v7066_v28, %v6501_v40  ;;  %v2257_v10 = vrot.slane %v2255_v13, 1  ;;  %v1109_v21 = vmul.f32 %v6501_v40, %v7074_v6  ;;  %v5341_v6 = vpop.f32.mrb[28].mxu1  ;;  %5036 = vmatpush3.bf16.msra.mxu0 %v5718_v25  ;;  %v2171_v28 = vld [vmem:[#allocation4 + $0x198] sm:$0x1] }
 0x140   : > { %vm7182_vm0 = vcmp.ne.s16.totalorder %v8100_v46, 0  ;;  %vm7189_vm11 = vcmp.ne.s16.totalorder %v8103_v27, 0  ;;  %v1114_v14 = vmul.f32 %v5337_v29, %v6501_v40  ;;  %v1112_v45 = vmul.f32 %v6501_v40, %v807_v33  ;;  %v823_v12 = vpop.f32.mrb[29].mxu1  ;;  %5037 = vmatprep.subr.bf16.mxu0 %v5719_v20 }
 0x141   : > { %v8106_v5 = vcombine.low %v6170_v49, %v6617_v3  ;;  %v2075_v59 = vor.u32 %v2073_v37, %v2072_v1  ;;  %v7220_v46 = vsel %vm8109_vm12, %v2072_v1, %v2083_v61  ;;  %v1181_v13 = vmax.f32 %v1149_v53, 0.0  ;;  %v5342_v1 = vpop.f32.mrb[30].mxu1 }
 0x142   : > { %v1150_v27 = vadd.f32 %v6527_v19, %v1111_v62  ;;  %2164 = vst [vmem:[#allocation4 + $0xf0] sm:$0xff] %v7220_v46  ;;  %v7226_v29 = vsel %vm2190_vm14, %v7119_v51, %v2257_v10  ;;  %v2261_v3 = vor.u32 %v2259_v55, %v2257_v10  ;;  %v1179_v33 = vmax.f32 %v1147_v36, 0.0  ;;  %v5720_v51 = vld [vmem:[%s7941_s6 + $0x38] sm:$0xff]   ;;  %v7253_v20 = vpop.f32.mrb[31].mxu1  ;;  %v7258_v10 = vld [vmem:[%s7941_s6 + $0x80] sm:$0xff]  }
 0x143   : > { %vm7215_vm10 = vcmp.ne.s16.totalorder %v8106_v5, 0  ;;  %8110 = vst [vmem:[#allocation10_spill] sm:$0xff] %v7226_v29  ;;  %v1148_v5 = vadd.f32 %v6527_v19, %v1109_v21  ;;  %v7231_v63 = vsel %vm8111_vm2, %v7079_v42, %v2075_v59  ;;  %2345 = vst [vmem:[#allocation4 + $0xd0] sm:$0xff] %v7226_v29  ;;  %v1153_v53 = vadd.f32 %v6527_v19, %v1114_v14 }
 0x144   : > { %v1182_v61 = vmax.f32 %v1150_v27, 0.0  ;;  %v1115_v37 = vmul.f32 %v5338_v41, %v6501_v40  ;;  %2163 = vst [vmem:[#allocation4 + $0xd8] sm:$0xff] %v7231_v63  ;;  %v7242_v25 = vsel %vm2190_vm14, %v2261_v3, %v7177_v0  ;;  %v1151_v55 = vadd.f32 %v6527_v19, %v1112_v45  ;;  %5372 = vmatmul.mubr.bf16.gmra.mrb[12].mxu0 %v7226_v29 }
 0x145   : > { %8112 = vst [vmem:[#allocation11_spill] sm:$0xff] %v7242_v25  ;;  %v1180_v42 = vmax.f32 %v1148_v5, 0.0  ;;  %v8113_v36 = vcombine.low %v6656_v24, %v6170_v49  ;;  %v1113_v62 = vmul.f32 %v6501_v40, %v810_v58  ;;  %2346 = vst [vmem:[#allocation4 + $0xe8] sm:$0xff] %v7242_v25  ;;  %v8116_v24 = vcombine.low %v6170_v49, %v6664_v15 }
 0x146   : > { %v7261_v21 = vpack.c.bf16 %v1182_v61, %v1181_v13  ;;  %v1154_v14 = vadd.f32 %v6527_v19, %v1115_v37  ;;  %v8119_v58 = vcombine.low %v6670_v8, %v6170_v49  ;;  %v4452_v13 = vcombine.low %v6743_v39, %v6170_v49  ;;  %5375 = vmatprep.mubr.bf16.mxu0 %v7242_v25  ;;  %v7294_v39 = vld [vmem:[#allocation4 + $0x90] sm:$0xff] }
 0x147   : > { %vm7248_vm3 = vcmp.ne.s16.totalorder %v8113_v36, 0  ;;  %vm7267_vm8 = vcmp.ne.s16.totalorder %v8116_v24, 0  ;;  %v8122_v27 = vand.u32 15, %v6677_v22  ;;  %v2267_v3 = vshrl.u32 %v7114_v11, 16  ;;  %2722 = vmatmul.mubr.bf16.gmra.mrb[52].mxu1 %v7294_v39  ;;  %5038 = vmatpush3.bf16.msra.mxu0 %v5720_v51 }
 0x148   : > { %vm7274_vm1 = vcmp.ne.s16.totalorder %v8119_v58, 0  ;;  %v7288_v5 = vpack.c.bf16 %v1180_v42, %v1179_v33  ;;  %v1152_v8 = vadd.f32 %v6527_v19, %v1113_v62  ;;  %v1795_v22 = vsel %vm7150_vm6, %v7261_v21, 0  ;;  %2185 = vst [vmem:[#allocation4 + $0x128] sm:$0xff] %v7261_v21  ;;  %2729 = vmatprep.mubr.bf16.mxu1 %v7071_v35  ;;  %5391 = vmatprep.subr.bf16.mxu0 %v7258_v10  ;;  %vm8130_vm6 = vmmov %vm8111_vm2 }
 0x149   : > { %vm7283_vm5 = vcmp.ne.s32.totalorder %v8122_v27, 0  ;;  %v1971_v37 = vsel %vm7157_vm9, %v7261_v21, 0  ;;  %v1185_v11 = vmax.f32 %v1153_v53, 0.0  ;;  %v1186_v33 = vmax.f32 %v1154_v14, 0.0 }
 0x14a   : > { %v2269_v42 = vor.u32 %v2267_v3, %v7177_v0  ;;  %v2094_v36 = vshrl.u32 %v1795_v22, 16  ;;  %v1183_v62 = vmax.f32 %v1151_v55, 0.0  ;;  %v1118_v24 = vmul.f32 %v5341_v6, %v6501_v40  ;;  %vm1860_vm9 = vmpackc.low %vm7283_vm5, %vm7283_vm5 }
 0x14b   : > { %v2279_v4 = vshll.u32 %v1971_v37, 16  ;;  %v1794_v23 = vsel %vm7182_vm0, %v7288_v5, 0  ;;  %v1970_v53 = vsel %vm7189_vm11, %v7288_v5, 0  ;;  %v7314_v51 = vpack.c.bf16 %v1186_v33, %v1185_v11  ;;  %vm8133_vm0 = vmmov %vm8111_vm2 }
 0x14c   : > { %v7316_v0 = vrot.slane %v2094_v36, 7  ;;  %v2097_v55 = vshll.u32 %v1795_v22, 16  ;;  %v2086_v14 = vshrl.u32 %v1794_v23, 16  ;;  %v1184_v6 = vmax.f32 %v1152_v8, 0.0  ;;  %vm8134_vm11 = vmmov %vm8133_vm0 }
 0x14d   : > { %v2271_v58 = vshll.u32 %v1970_v53, 16  ;;  %v1797_v27 = vsel %vm7215_vm10, %v7314_v51, 0  ;;  %v1116_v3 = vmul.f32 %v6501_v40, %v823_v12  ;;  %v1119_v50 = vmul.f32 %v5342_v1, %v6501_v40  ;;  %vm2353_vm2 = vmand %vm2150_vm15, %vm2190_vm14 }
 0x14e   : > { %v2099_v61 = vor.u32 %v2097_v55, %v7316_v0  ;;  %v2088_v2 = vrot.slane %v2086_v14, 7  ;;  %v2089_v25 = vshll.u32 %v1794_v23, 16  ;;  %v2110_v11 = vshrl.u32 %v1797_v27, 16  ;;  %vm8137_vm15 = vmmov %vm8133_vm0 }
 0x14f   : > { %v2281_v33 = vrot.slane %v2279_v4, 1  ;;  %v2273_v36 = vrot.slane %v2271_v58, 1  ;;  %v2275_v29 = vshrl.u32 %v1970_v53, 16  ;;  %v1157_v22 = vadd.f32 %v6527_v19, %v1118_v24  ;;  %2730 = vmatmul.mubr.bf16.gmra.mrb[56].mxu1 %v7166_v34  ;;  %v7372_v53 = vld [vmem:[#allocation4] sm:$0xff] }
 0x150   : > { %v8125_v8 = vcombine.low %v6170_v49, %v6688_v56  ;;  %vm7332_vm4 = vcmp.ne.s16.totalorder %v4452_v13, 0  ;;  %v2091_v40 = vor.u32 %v2089_v25, %v2088_v2  ;;  %v7337_v1 = vsel %vm8130_vm6, %v2088_v2, %v2099_v61  ;;  %2737 = vmatprep.mubr.bf16.mxu1 %v7020_v48 }
 0x151   : > { %v7339_v4 = vrot.slane %v2110_v11, 7  ;;  %v7341_v23 = vpack.c.bf16 %v1184_v6, %v1183_v62  ;;  %v7347_v56 = vsel %vm2190_vm14, %v2269_v42, %v2273_v36  ;;  %v2277_v24 = vor.u32 %v2275_v29, %v2273_v36  ;;  %v5770_v11 = vld [vmem:[%s7939_s4] ss:$0 sm:$0xff] }
 0x152   : > { %vm7328_vm13 = vcmp.ne.s16.totalorder %v8125_v8, 0  ;;  %v7352_v13 = vsel %vm7248_vm3, %v7314_v51, 0  ;;  %v2113_v25 = vshll.u32 %v1797_v27, 16  ;;  %v2283_v61 = vshrl.u32 %v1971_v37, 16  ;;  %2347 = vst [vmem:[#allocation4 + $0x100] sm:$0xff] %v7347_v56  ;;  %5376 = vmatmul.mubr.bf16.gmra.mrb[16].mxu0 %v7347_v56 }
 0x153   : > { %v7357_v62 = vsel %vm8131_vm7, %v7133_v32, %v2091_v40  ;;  %v1796_v42 = vsel %vm7267_vm8, %v7341_v23, 0  ;;  %v1972_v29 = vsel %vm7274_vm1, %v7341_v23, 0  ;;  %v7369_v41 = vsel %vm2190_vm14, %v2277_v24, %v2281_v33  ;;  %vm8138_vm8 = vmmov %vm8133_vm0 }
 0x154   : > { %8132 = vst [vmem:[#allocation12_spill] sm:$0xff] %v7369_v41  ;;  %v2115_v32 = vor.u32 %v2113_v25, %v7339_v4  ;;  %v2102_v37 = vshrl.u32 %v1796_v42, 16  ;;  %v1892_v45 = vsel %vm1860_vm9, 65537, %v7372_v53  ;;  %v2285_v59 = vor.u32 %v2283_v61, %v2281_v33  ;;  %2348 = vst [vmem:[#allocation4 + $0x118] sm:$0xff] %v7369_v41  ;;  %5379 = vmatprep.mubr.bf16.mxu0 %v7369_v41 }
 0x155   : > { %v2295_v55 = vshll.u32 %v7352_v13, 16  ;;  %v2287_v14 = vshll.u32 %v1972_v29, 16  ;;  %v1158_v6 = vadd.f32 %v6527_v19, %v1119_v50  ;;  %v2105_v27 = vshll.u32 %v1796_v42, 16 }
 0x156   : > { %v2104_v58 = vrot.slane %v2102_v37, 7  ;;  %v1189_v2 = vmax.f32 %v1157_v22, 0.0  ;;  %v1117_v15 = vmul.f32 %v5770_v11, %v7253_v20  ;;  %v2291_v33 = vshrl.u32 %v1972_v29, 16 }
 0x157   : > { %v2289_v36 = vrot.slane %v2287_v14, 1  ;;  %v1155_v8 = vadd.f32 %v6527_v19, %v1116_v3  ;;  %v1190_v40 = vmax.f32 %v1158_v6, 0.0  ;;  %v4451_v61 = vcombine.low %v1892_v45, %v6170_v49  ;;  %2738 = vmatmul.mubr.bf16.gmra.mrb[60].mxu1 %v7131_v30 }
 0x158   : > { %v2107_v24 = vor.u32 %v2105_v27, %v2104_v58  ;;  %v7390_v25 = vsel %vm8133_vm0, %v2104_v58, %v2115_v32  ;;  %v1156_v50 = vadd.f32 %v6527_v19, %v1117_v15  ;;  %v2297_v22 = vrot.slane %v2295_v55, 1  ;;  %2745 = vmatprep.mubr.bf16.mxu1 %v7125_v9 }
 0x159   : > { %v7395_v42 = vsel %vm2190_vm14, %v2285_v59, %v2289_v36  ;;  %v2293_v37 = vor.u32 %v2291_v33, %v2289_v36  ;;  %v7397_v41 = vpack.c.bf16 %v1190_v40, %v1189_v2  ;;  %v1187_v29 = vmax.f32 %v1155_v8, 0.0  ;;  %v2354_v2 = vld [vmem:[#allocation4 + $0x190] sm:$0xff] }
 0x15a   : > { %v7401_v20 = vsel %vm8134_vm11, %v7316_v0, %v2107_v24  ;;  %2349 = vst [vmem:[#allocation4 + $0x130] sm:$0xff] %v7395_v42  ;;  %v1188_v3 = vmax.f32 %v1156_v50, 0.0  ;;  %5380 = vmatmul.mubr.bf16.gmra.mrb[20].mxu0 %v7395_v42  ;;  %v8135_v55 = vcombine.low %v6170_v49, %v6951_v38  ;;  %vm1958_vm12 = vcmp.ne.s16.totalorder %v4451_v61, 0 }
 0x15b   : > { %v7406_v19 = vsel %vm2190_vm14, %v2293_v37, %v2297_v22  ;;  %v1799_v32 = vsel %vm7328_vm13, %v7397_v41, 0  ;;  %v1975_v45 = vsel %vm7332_vm4, %v7397_v41, 0  ;;  %2189 = vst [vmem:[#allocation4 + $0x188] sm:$0xff] %v7397_v41  ;;  %vm8136_vm3 = vnez %v7955_v60 }
 0x15c   : > { %2350 = vst [vmem:[#allocation4 + $0x148] sm:$0xff] %v7406_v19  ;;  %v2126_v0 = vshrl.u32 %v1799_v32, 16  ;;  %v2311_v59 = vshll.u32 %v1975_v45, 16  ;;  %vm1782_vm10 = vcmp.ne.s16.totalorder %v8135_v55, 0  ;;  %5383 = vmatprep.mubr.bf16.mxu0 %v7406_v19  ;;  %v7422_v12 = vpack.c.bf16 %v1188_v3, %v1187_v29  ;;  %v5735_v55 = vld [vmem:[%s7941_s6 + $0x98] sm:$0xff]  }
 0x15d   : > { %v2129_v6 = vshll.u32 %v1799_v32, 16  ;;  %v2315_v27 = vshrl.u32 %v1975_v45, 16  ;;  %v2299_v8 = vshrl.u32 %v7352_v13, 16 }
 0x15e   : > { %v2128_v14 = vrot.slane %v2126_v0, 7  ;;  %v2313_v58 = vrot.slane %v2311_v59, 1  ;;  %v1798_v11 = vsel %vm1782_vm10, %v7422_v12, 0  ;;  %v1974_v15 = vsel %vm1958_vm12, %v7422_v12, 0  ;;  %v5729_v59 = vld [vmem:[%s7941_s6 + $0x90] sm:$0xff]  }
 0x15f   : > { %v2118_v33 = vshrl.u32 %v1798_v11, 16  ;;  %v2303_v40 = vshll.u32 %v1974_v15, 16  ;;  %v2121_v61 = vshll.u32 %v1798_v11, 16  ;;  %2746 = vmatmul.mubr.bf16.gmra.mrb[64].mxu1 %v7231_v63  ;;  %v2301_v37 = vor.u32 %v2299_v8, %v2297_v22  ;;  %v8140_v8 = vld [vmem:[#allocation6_spill] sm:$0xff] }
 0x160   : > { %v2131_v49 = vor.u32 %v2129_v6, %v2128_v14  ;;  %v2172_v38 = vsel %vm8136_vm3, %v2128_v14, %v2171_v28  ;;  %v2317_v36 = vor.u32 %v2315_v27, %v2313_v58  ;;  %v2307_v29 = vshrl.u32 %v1974_v15, 16  ;;  %2753 = vmatprep.mubr.bf16.mxu1 %v7093_v57  ;;  %v5742_v28 = vld [vmem:[%s7941_s6 + $0xa8] sm:$0xff]   ;;  %v5744_v14 = vld [vmem:[%s7941_s6 + $0xb8] sm:$0xff]   ;;  %v8139_v15 = vld [vmem:[#allocation5_spill] sm:$0xff] }
 0x161   : > { %2173 = vst [vmem:[#allocation4 + $0x198] sm:$0x1] %v2172_v38  ;;  %v2120_v50 = vrot.slane %v2118_v33, 7  ;;  %v2305_v3 = vrot.slane %v2303_v40, 1  ;;  %v3440_v6 = vld [vmem:[#allocation4 + $0x48] sm:$0xff] }
 0x162   : > { %v2355_v24 = vsel %vm2353_vm2, %v2317_v36, %v2354_v2  ;;  %v5772_v2 = vld [vmem:[#allocation4 + $0x28] sm:$0xff]  ;;  %v5748_v36 = vld [vmem:[%s7941_s6 + $0x218] sm:$0xff]  }
 0x163   : > { %2356 = vst [vmem:[#allocation4 + $0x190] sm:$0xff] %v2355_v24  ;;  %v2123_v32 = vor.u32 %v2121_v61, %v2120_v50  ;;  %v7434_v60 = vsel %vm8137_vm15, %v2120_v50, %v2131_v49  ;;  %v7438_v13 = vsel %vm2190_vm14, %v2301_v37, %v2305_v3  ;;  %v2309_v45 = vor.u32 %v2307_v29, %v2305_v3  ;;  %v8141_v50 = vld [vmem:[#allocation7_spill] sm:$0xff]  ;;  %v5750_v3 = vld [vmem:[%s7941_s6 + $0x228] sm:$0xff]  }
 0x164   : > { %2170 = vst [vmem:[#allocation4 + $0x180] sm:$0xff] %v7434_v60  ;;  %5384 = vmatmul.mubr.bf16.gmra.mrb[24].mxu0 %v7438_v13 }
 0x165   : > { %v7442_v0 = vsel %vm8138_vm8, %v7339_v4, %v2123_v32  ;;  %v7446_v22 = vsel %vm2190_vm14, %v2309_v45, %v2313_v58  ;;  %v5726_v4 = vld [vmem:[%s7941_s6 + $0x88] sm:$0xff]   ;;  %v3446_v58 = vld [vmem:[#allocation4 + $0x78] sm:$0xff] }
 0x166   : > { %5387 = vmatprep.mubr.bf16.mxu0 %v7446_v22  ;;  %v8142_v32 = vld [vmem:[#allocation8_spill] sm:$0xff] }
 0x167   : > { %2754 = vmatmul.mubr.bf16.gmra.mrb[68].mxu1 %v7220_v46 }
 0x168   : > { %2761 = vmatprep.mubr.bf16.mxu1 %v7288_v5 }
 0x16c   : > { %5388 = vmatmul.mubr.bf16.gmra.mrb[28].mxu0 %v2355_v24 }
 0x16d   : > { %3147 = vmatprep.mubr.bf16.mxu0 %v7372_v53 }
 0x16f   : > { %2762 = vmatmul.mubr.bf16.gmra.mrb[72].mxu1 %v7357_v62 }
 0x170   : > { %2769 = vmatprep.mubr.bf16.mxu1 %v7261_v21 }
 0x174   : > { %3148 = vmatmul.mubr.bf16.vlgmr.msra.gmra.mrb[32].mxu0 %v7372_v53 }
 0x175   : > { %5392 = vmatpush3.bf16.msra.mxu0 %v7258_v10  ;;  %3155 = vmatprep.mubr.bf16.mxu0 %v6690_v31  ;;  %v5771_v10 = vld [vmem:[#allocation4 + $0x38] sm:$0xff]  ;;  %v5741_v31 = vld [vmem:[%s7941_s6 + $0xa0] sm:$0xff]  }
 0x176   : > { %5393 = vmatprep.subr.bf16.mxu0 %v5726_v4 }
 0x177   : > { %2770 = vmatmul.mubr.bf16.gmra.mrb[76].mxu1 %v7337_v1 }
 0x178   : > { %2777 = vmatprep.mubr.bf16.mxu1 %v7341_v23 }
 0x179   : > { %5394 = vmatpush3.bf16.msra.mxu0 %v5726_v4 }
 0x17a   : > { %5395 = vmatprep.subr.bf16.mxu0 %v5729_v59 }
 0x17c   : > { %3156 = vmatmul.mubr.bf16.gmra.mrb[36].mxu0 %v6803_v18  ;;  %v5743_v18 = vld [vmem:[%s7941_s6 + $0xb0] sm:$0xff]  }
 0x17d   : > { %3163 = vmatprep.mubr.bf16.mxu0 %v5771_v10  ;;  %5396 = vmatpush3.bf16.msra.mxu0 %v5729_v59 }
 0x17e   : > { %5397 = vmatprep.subr.bf16.mxu0 %v5735_v55 }
 0x17f   : > { %2778 = vmatmul.mubr.bf16.gmra.mrb[80].mxu1 %v7401_v20 }
 0x180   : > { %2785 = vmatprep.mubr.bf16.mxu1 %v7314_v51 }
 0x181   : > { %5398 = vmatpush3.bf16.msra.mxu0 %v5735_v55 }
 0x182   : > { %5399 = vmatprep.subr.bf16.mxu0 %v5741_v31 }
 0x184   : > { %3164 = vmatmul.mubr.bf16.gmra.mrb[40].mxu0 %v6775_v16  ;;  %v7492_v16 = vld [vmem:[%s7941_s6 + $0x200] sm:$0xff]  }
 0x185   : > { %3171 = vmatprep.mubr.bf16.mxu0 %v6843_v26  ;;  %5400 = vmatpush3.bf16.msra.mxu0 %v5741_v31  ;;  %v3437_v26 = vld [vmem:[#allocation4 + $0x30] sm:$0xff] }
 0x186   : > { %5401 = vmatprep.subr.bf16.mxu0 %v5742_v28  ;;  %v8143_v31 = vld [vmem:[#allocation9_spill] sm:$0xff] }
 0x187   : > { %2786 = vmatmul.mubr.bf16.gmra.mrb[84].mxu1 %v7390_v25 }
 0x188   : > { %2793 = vmatprep.mubr.bf16.mxu1 %v7422_v12 }
 0x189   : > { %5402 = vmatpush3.bf16.msra.mxu0 %v5742_v28 }
 0x18a   : > { %5403 = vmatprep.subr.bf16.mxu0 %v5743_v18 }
 0x18c   : > { %3172 = vmatmul.mubr.bf16.gmra.mrb[44].mxu0 %v6923_v52  ;;  %v3441_v52 = vld [vmem:[#allocation4 + $0x50] sm:$0xff] }
 0x18d   : > { %3179 = vmatprep.mubr.bf16.mxu0 %v6796_v54  ;;  %5404 = vmatpush3.bf16.msra.mxu0 %v5743_v18  ;;  %v3438_v54 = vld [vmem:[#allocation4 + $0x38] sm:$0xff] }
 0x18e   : > { %5405 = vmatprep.subr.bf16.mxu0 %v5744_v14 }
 0x18f   : > { %2794 = vmatmul.mubr.bf16.gmra.mrb[88].mxu1 %v7442_v0 }
 0x190   : > { %2801 = vmatprep.mubr.bf16.mxu1 %v7397_v41 }
 0x191   : > { %5406 = vmatpush3.bf16.msra.mxu0 %v5744_v14  ;;  %v8144_v14 = vld [vmem:[#allocation10_spill] sm:$0xff] }
 0x192   : > { %5439 = vmatprep.subr.bf16.mxu0 %v7492_v16 }
 0x194   : > { %3180 = vmatmul.mubr.bf16.gmra.mrb[48].mxu0 %v6888_v47  ;;  %v3444_v47 = vld [vmem:[#allocation4 + $0x68] sm:$0xff] }
 0x195   : > { %3187 = vmatprep.mubr.bf16.mxu0 %v6881_v44  ;;  %v3443_v44 = vld [vmem:[#allocation4 + $0x60] sm:$0xff] }
 0x197   : > { %2802 = vmatmul.mubr.bf16.gmra.mrb[92].mxu1 %v7434_v60 }
 0x198   : > { %3710 = vmatprep.mubr.bf16.mxu1 %v3438_v54 }
 0x19c   : > { %3188 = vmatmul.mubr.bf16.gmra.mrb[52].mxu0 %v7017_v7  ;;  %v3447_v7 = vld [vmem:[#allocation4 + $0x80] sm:$0xff] }
 0x19d   : > { %3195 = vmatprep.mubr.bf16.mxu0 %v7194_v43 }
 0x19f   : > { %3711 = vmatmul.mubr.bf16.vlgmr.msra.gmra.mrb[96].mxu1 %v3437_v26  ;;  %v8145_v26 = vld [vmem:[#allocation11_spill] sm:$0xff] }
 0x1a0   : > { %3718 = vmatprep.mubr.bf16.mxu1 %v3441_v52 }
 0x1a4   : > { %3196 = vmatmul.mubr.bf16.gmra.mrb[56].mxu0 %v7294_v39 }
 0x1a5   : > { %3203 = vmatprep.mubr.bf16.mxu0 %v7071_v35  ;;  %v3453_v35 = vld [vmem:[#allocation4 + $0xb0] sm:$0xff] }
 0x1a7   : > { %3719 = vmatmul.mubr.bf16.gmra.mrb[100].mxu1 %v3440_v6 }
 0x1a8   : > { %3726 = vmatprep.mubr.bf16.mxu1 %v3444_v47 }
 0x1ac   : > { %3204 = vmatmul.mubr.bf16.gmra.mrb[60].mxu0 %v7166_v34  ;;  %v3459_v34 = vld [vmem:[#allocation4 + $0xe0] sm:$0xff] }
 0x1ad   : > { %3211 = vmatprep.mubr.bf16.mxu0 %v7020_v48  ;;  %v3452_v48 = vld [vmem:[#allocation4 + $0xa8] sm:$0xff] }
 0x1af   : > { %3727 = vmatmul.mubr.bf16.gmra.mrb[104].mxu1 %v3443_v44 }
 0x1b0   : > { %3734 = vmatprep.mubr.bf16.mxu1 %v3447_v7  ;;  %v3482_v7 = vld [vmem:[#allocation4 + $0x198] sm:$0xff] }
 0x1b4   : > { %3212 = vmatmul.mubr.bf16.gmra.mrb[64].mxu0 %v7131_v30  ;;  %v3456_v30 = vld [vmem:[#allocation4 + $0xc8] sm:$0xff] }
 0x1b5   : > { %3219 = vmatprep.mubr.bf16.mxu0 %v7125_v9  ;;  %v3455_v9 = vld [vmem:[#allocation4 + $0xc0] sm:$0xff] }
 0x1b7   : > { %3735 = vmatmul.mubr.bf16.gmra.mrb[108].mxu1 %v3446_v58 }
 0x1b8   : > { %3742 = vmatprep.mubr.bf16.mxu1 %v7194_v43  ;;  %v3462_v43 = vld [vmem:[#allocation4 + $0xf8] sm:$0xff] }
 0x1bc   : > { %3220 = vmatmul.mubr.bf16.gmra.mrb[68].mxu0 %v7231_v63  ;;  %v3468_v63 = vld [vmem:[#allocation4 + $0x128] sm:$0xff] }
 0x1bd   : > { %3227 = vmatprep.mubr.bf16.mxu0 %v7093_v57  ;;  %v3458_v57 = vld [vmem:[#allocation4 + $0xd8] sm:$0xff] }
 0x1bf   : > { %3743 = vmatmul.mubr.bf16.gmra.mrb[112].mxu1 %v7294_v39 }
 0x1c0   : > { %3750 = vmatprep.mubr.bf16.mxu1 %v3453_v35  ;;  %v8146_v35 = vld [vmem:[#allocation12_spill] sm:$0xff] }
 0x1c4   : > { %3228 = vmatmul.mubr.bf16.gmra.mrb[72].mxu0 %v7220_v46  ;;  %v3461_v46 = vld [vmem:[#allocation4 + $0xf0] sm:$0xff] }
 0x1c5   : > { %3235 = vmatprep.mubr.bf16.mxu0 %v7288_v5 }
 0x1c7   : > { %3751 = vmatmul.mubr.bf16.gmra.mrb[116].mxu1 %v3452_v48 }
 0x1c8   : > { %3758 = vmatprep.mubr.bf16.mxu1 %v3456_v30 }
 0x1cc   : > { %3236 = vmatmul.mubr.bf16.gmra.mrb[76].mxu0 %v7357_v62 }
 0x1cd   : > { %3243 = vmatprep.mubr.bf16.mxu0 %v7261_v21  ;;  %v2359_v21 = vld [vmem:[#allocation4 + $0x10] sm:$0xff] }
 0x1cf   : > { %3759 = vmatmul.mubr.bf16.gmra.mrb[120].mxu1 %v3455_v9 }
 0x1d0   : > { %3766 = vmatprep.mubr.bf16.mxu1 %v3459_v34 }
 0x1d4   : > { %3244 = vmatmul.mubr.bf16.gmra.mrb[80].mxu0 %v7337_v1 }
 0x1d5   : > { %3251 = vmatprep.mubr.bf16.mxu0 %v7341_v23 }
 0x1d7   : > { %3767 = vmatmul.mubr.bf16.gmra.mrb[124].mxu1 %v3458_v57 }
 0x1d8   : > { %3774 = vmatprep.mubr.bf16.mxu1 %v3462_v43 }
 0x1dc   : > { %3252 = vmatmul.mubr.bf16.gmra.mrb[84].mxu0 %v7401_v20 }
 0x1dd   : > { %3259 = vmatprep.mubr.bf16.mxu0 %v7314_v51 }
 0x1df   : > { %3775 = vmatmul.mubr.bf16.gmra.mrb[128].mxu1 %v3461_v46 }
 0x1e0   : > { %3782 = vmatprep.mubr.bf16.mxu1 %v7288_v5  ;;  %v5746_v5 = vld [vmem:[%s7941_s6 + $0x208] sm:$0xff]  }
 0x1e4   : > { %3260 = vmatmul.mubr.bf16.gmra.mrb[88].mxu0 %v7390_v25 }
 0x1e5   : > { %3267 = vmatprep.mubr.bf16.mxu0 %v7422_v12 }
 0x1e7   : > { %3783 = vmatmul.mubr.bf16.gmra.mrb[132].mxu1 %v7357_v62 }
 0x1e8   : > { %3790 = vmatprep.mubr.bf16.mxu1 %v3468_v63 }
 0x1e9   : > { %v4903_v39 = vpop.f32.mrb[32].mxu1 }
 0x1ea   : > { %v4904_v27 = vpop.f32.mrb[33].mxu1 }
 0x1eb   : > { %v7530_v11 = vadd.f32 %v4904_v27, %v4903_v39  ;;  %v4906_v62 = vpop.f32.mrb[34].mxu1 }
 0x1ec   : > { %3268 = vmatmul.mubr.bf16.gmra.mrb[92].mxu0 %v7442_v0  ;;  %v4907_v49 = vpop.f32.mrb[35].mxu1 }
 0x1ed   : > { %5407 = vmatprep.mubr.bf16.mxu0 %v2359_v21 }
 0x1ef   : > { %3791 = vmatmul.mubr.bf16.gmra.mrb[136].mxu1 %v7337_v1  ;;  %v5747_v1 = vld [vmem:[%s7941_s6 + $0x210] sm:$0xff]  }
 0x1f0   : > { %3798 = vmatprep.mubr.bf16.mxu1 %v7341_v23  ;;  %v7537_v23 = vadd.f32 %v4907_v49, %v4906_v62 }
 0x1f1   : > { %v4909_v38 = vpop.f32.mrb[36].mxu1 }
 0x1f2   : > { %v4910_v33 = vpop.f32.mrb[37].mxu1 }
 0x1f3   : > { %v7545_v40 = vadd.f32 %v4910_v33, %v4909_v38  ;;  %v4912_v24 = vpop.f32.mrb[38].mxu1 }
 0x1f4   : > { %5408 = vmatmul.mubr.bf16.vlgmr.msra.gmra.mrb[0].mxu0 %v5772_v2  ;;  %v4913_v61 = vpop.f32.mrb[39].mxu1 }
 0x1f5   : > { %5440 = vmatpush3.bf16.msra.mxu0 %v7492_v16  ;;  %5411 = vmatprep.mubr.bf16.mxu0 %v8139_v15  ;;  %v3442_v15 = vld [vmem:[#allocation4 + $0x58] sm:$0xff] }
 0x1f6   : > { %5441 = vmatprep.subr.bf16.mxu0 %v5746_v5 }
 0x1f7   : > { %3799 = vmatmul.mubr.bf16.gmra.mrb[140].mxu1 %v7401_v20  ;;  %v7548_v20 = vadd.f32 %v4913_v61, %v4912_v24 }
 0x1f8   : > { %3806 = vmatprep.mubr.bf16.mxu1 %v7314_v51  ;;  %v5749_v51 = vld [vmem:[%s7941_s6 + $0x220] sm:$0xff]  }
 0x1f9   : > { %5442 = vmatpush3.bf16.msra.mxu0 %v5746_v5  ;;  %v4915_v37 = vpop.f32.mrb[40].mxu1 }
 0x1fa   : > { %5443 = vmatprep.subr.bf16.mxu0 %v5747_v1  ;;  %v4916_v29 = vpop.f32.mrb[41].mxu1 }
 0x1fb   : > { %v7559_v45 = vadd.f32 %v4916_v29, %v4915_v37  ;;  %v4918_v4 = vpop.f32.mrb[42].mxu1 }
 0x1fc   : > { %5412 = vmatmul.mubr.bf16.gmra.mrb[4].mxu0 %v8140_v8  ;;  %v4919_v59 = vpop.f32.mrb[43].mxu1 }
 0x1fd   : > { %5415 = vmatprep.mubr.bf16.mxu0 %v8141_v50  ;;  %5444 = vmatpush3.bf16.msra.mxu0 %v5747_v1  ;;  %v3445_v1 = vld [vmem:[#allocation4 + $0x70] sm:$0xff]  ;;  %v3448_v50 = vld [vmem:[#allocation4 + $0x88] sm:$0xff] }
 0x1fe   : > { %5445 = vmatprep.subr.bf16.mxu0 %v5748_v36 }
 0x1ff   : > { %3807 = vmatmul.mubr.bf16.gmra.mrb[144].mxu1 %v7390_v25  ;;  %v7562_v25 = vadd.f32 %v4919_v59, %v4918_v4  ;;  %v3454_v59 = vld [vmem:[#allocation4 + $0xb8] sm:$0xff] }
 0x200   : > { %3814 = vmatprep.mubr.bf16.mxu1 %v7422_v12  ;;  %v5751_v12 = vld [vmem:[%s7941_s6 + $0x230] sm:$0xff]  }
 0x201   : > { %5446 = vmatpush3.bf16.msra.mxu0 %v5748_v36  ;;  %v4921_v55 = vpop.f32.mrb[44].mxu1 }
 0x202   : > { %5447 = vmatprep.subr.bf16.mxu0 %v5749_v51  ;;  %v4922_v10 = vpop.f32.mrb[45].mxu1 }
 0x203   : > { %v7573_v28 = vadd.f32 %v4922_v10, %v4921_v55  ;;  %v4924_v18 = vpop.f32.mrb[46].mxu1  ;;  %v3457_v55 = vld [vmem:[#allocation4 + $0xd0] sm:$0xff] }
 0x204   : > { %5416 = vmatmul.mubr.bf16.gmra.mrb[8].mxu0 %v8142_v32  ;;  %v4925_v16 = vpop.f32.mrb[47].mxu1 }
 0x205   : > { %5419 = vmatprep.mubr.bf16.mxu0 %v7138_v17  ;;  %5448 = vmatpush3.bf16.msra.mxu0 %v5749_v51  ;;  %v5752_v17 = vld [vmem:[%s7941_s6 + $0x238] sm:$0xff]   ;;  %v3451_v51 = vld [vmem:[#allocation4 + $0xa0] sm:$0xff] }
 0x206   : > { %5449 = vmatprep.subr.bf16.mxu0 %v5750_v3 }
 0x207   : > { %3815 = vmatmul.mubr.bf16.gmra.mrb[148].mxu1 %v7442_v0  ;;  %v7576_v0 = vadd.f32 %v4925_v16, %v4924_v18 }
 0x208   : > { %3822 = vmatprep.mubr.bf16.mxu1 %v7397_v41 }
 0x209   : > { %5450 = vmatpush3.bf16.msra.mxu0 %v5750_v3  ;;  %v4927_v41 = vpop.f32.mrb[48].mxu1 }
 0x20a   : > { %5451 = vmatprep.subr.bf16.mxu0 %v5751_v12  ;;  %v4928_v54 = vpop.f32.mrb[49].mxu1 }
 0x20b   : > { %v7581_v52 = vadd.f32 %v4928_v54, %v4927_v41  ;;  %v4930_v6 = vpop.f32.mrb[50].mxu1 }
 0x20c   : > { %5420 = vmatmul.mubr.bf16.gmra.mrb[12].mxu0 %v8143_v31  ;;  %v4931_v47 = vpop.f32.mrb[51].mxu1 }
 0x20d   : > { %5423 = vmatprep.mubr.bf16.mxu0 %v8144_v14  ;;  %5452 = vmatpush3.bf16.msra.mxu0 %v5751_v12  ;;  %v7584_v44 = vadd.f32 %v4931_v47, %v4930_v6 }
 0x20e   : > { %5453 = vmatprep.subr.bf16.mxu0 %v5752_v17 }
 0x20f   : > { %3823 = vmatmul.mubr.bf16.gmra.mrb[152].mxu1 %v7434_v60 }
 0x210   : > { %3830 = vmatprep.mubr.bf16.mxu1 %v7372_v53 }
 0x211   : > { %5454 = vmatpush3.bf16.msra.mxu0 %v5752_v17 }
 0x214   : > { %5424 = vmatmul.mubr.bf16.gmra.mrb[16].mxu0 %v8145_v26 }
 0x215   : > { %5427 = vmatprep.mubr.bf16.mxu0 %v7347_v56 }
 0x217   : > { %3831 = vmatmul.mubr.bf16.gmra.mrb[156].mxu1 %v3482_v7 }
 0x21a   : > { %v4933_v58 = vpop.f32.mrb[52].mxu1 }
 0x21b   : > { %v4934_v60 = vpop.f32.mrb[53].mxu1 }
 0x21c   : > { %5428 = vmatmul.mubr.bf16.gmra.mrb[20].mxu0 %v8146_v35  ;;  %v7588_v48 = vadd.f32 %v4934_v60, %v4933_v58  ;;  %v4936_v30 = vpop.f32.mrb[54].mxu1  ;;  %v3460_v58 = vld [vmem:[#allocation4 + $0xe8] sm:$0xff]  ;;  %v3463_v60 = vld [vmem:[#allocation4 + $0x100] sm:$0xff] }
 0x21d   : > { %5431 = vmatprep.mubr.bf16.mxu0 %v7395_v42  ;;  %v4937_v9 = vpop.f32.mrb[55].mxu1  ;;  %v3439_v42 = vld [vmem:[#allocation4 + $0x40] sm:$0xff] }
 0x21e   : > { %v7590_v34 = vadd.f32 %v4937_v9, %v4936_v30 }
 0x222   : > { %v4939_v57 = vpop.f32.mrb[56].mxu1 }
 0x223   : > { %v4940_v56 = vpop.f32.mrb[57].mxu1 }
 0x224   : > { %5432 = vmatmul.mubr.bf16.gmra.mrb[24].mxu0 %v7406_v19  ;;  %v7594_v43 = vadd.f32 %v4940_v56, %v4939_v57  ;;  %v4942_v46 = vpop.f32.mrb[58].mxu1 }
 0x225   : > { %5435 = vmatprep.mubr.bf16.mxu0 %v7438_v13  ;;  %v4943_v63 = vpop.f32.mrb[59].mxu1 }
 0x226   : > { %v7596_v21 = vadd.f32 %v4943_v63, %v4942_v46 }
 0x22a   : > { %v4945_v5 = vpop.f32.mrb[60].mxu1 }
 0x22b   : > { %v4946_v39 = vpop.f32.mrb[61].mxu1 }
 0x22c   : > { %5436 = vmatmul.mubr.bf16.gmra.mrb[28].mxu0 %v7446_v22  ;;  %v7599_v27 = vadd.f32 %v4946_v39, %v4945_v5  ;;  %v4948_v2 = vpop.f32.mrb[62].mxu1 }
 0x22d   : > { %5455 = vmatprep.mubr.bf16.mxu0 %v3439_v42  ;;  %v4949_v62 = vpop.f32.mrb[63].mxu1 }
 0x22e   : > { %v7601_v19 = vadd.f32 %v4949_v62, %v4948_v2 }
 0x232   : > { %v4951_v49 = vpop.f32.mrb[64].mxu1 }
 0x233   : > { %v4952_v38 = vpop.f32.mrb[65].mxu1 }
 0x234   : > { %5456 = vmatmul.mubr.bf16.vlgmr.msra.gmra.mrb[0].mxu0 %v3442_v15  ;;  %v7603_v36 = vadd.f32 %v4952_v38, %v4951_v49  ;;  %v4954_v33 = vpop.f32.mrb[66].mxu1  ;;  %v3466_v49 = vld [vmem:[#allocation4 + $0x118] sm:$0xff] }
 0x235   : > { %5459 = vmatprep.mubr.bf16.mxu0 %v3445_v1  ;;  %v4955_v8 = vpop.f32.mrb[67].mxu1 }
 0x236   : > { %v7605_v24 = vadd.f32 %v4955_v8, %v4954_v33 }
 0x23a   : > { %v4957_v61 = vpop.f32.mrb[68].mxu1 }
 0x23b   : > { %v4958_v37 = vpop.f32.mrb[69].mxu1 }
 0x23c   : > { %5460 = vmatmul.mubr.bf16.gmra.mrb[4].mxu0 %v3448_v50  ;;  %v7607_v3 = vadd.f32 %v4958_v37, %v4957_v61  ;;  %v4960_v29 = vpop.f32.mrb[70].mxu1 }
 0x23d   : > { %5463 = vmatprep.mubr.bf16.mxu0 %v3451_v51  ;;  %v4961_v32 = vpop.f32.mrb[71].mxu1 }
 0x23e   : > { %v7609_v4 = vadd.f32 %v4961_v32, %v4960_v29 }
 0x242   : > { %v4963_v12 = vpop.f32.mrb[72].mxu1 }
 0x243   : > { %v4964_v17 = vpop.f32.mrb[73].mxu1 }
 0x244   : > { %5464 = vmatmul.mubr.bf16.gmra.mrb[8].mxu0 %v3454_v59  ;;  %v7611_v10 = vadd.f32 %v4964_v17, %v4963_v12  ;;  %v4966_v31 = vpop.f32.mrb[74].mxu1  ;;  %v3472_v17 = vld [vmem:[#allocation4 + $0x148] sm:$0xff] }
 0x245   : > { %5467 = vmatprep.mubr.bf16.mxu0 %v3457_v55  ;;  %v4967_v18 = vpop.f32.mrb[75].mxu1 }
 0x246   : > { %v7613_v16 = vadd.f32 %v4967_v18, %v4966_v31 }
 0x247   : > { %v5039_v14 = vpop.f32.mrb[32].mxu0 }
 0x248   : > { %v5040_v41 = vpop.f32.mrb[33].mxu0 }
 0x249   : > { %v5041_v54 = vadd.f32 %v5040_v41, %v5039_v14  ;;  %v5042_v26 = vpop.f32.mrb[34].mxu0 }
 0x24a   : > { %v5043_v6 = vpop.f32.mrb[35].mxu0  ;;  %v4969_v35 = vpop.f32.mrb[76].mxu1 }
 0x24b   : > { %v7616_v47 = vadd.f32 %v5041_v54, %v7530_v11  ;;  %v5044_v7 = vadd.f32 %v5043_v6, %v5042_v26  ;;  %v4970_v30 = vpop.f32.mrb[77].mxu1 }
 0x24c   : > { %5468 = vmatmul.mubr.bf16.gmra.mrb[12].mxu0 %v3460_v58  ;;  %v7621_v57 = vadd.f32 %v4970_v30, %v4969_v35  ;;  %v4972_v56 = vpop.f32.mrb[78].mxu1 }
 0x24d   : > { %v7619_v9 = vadd.f32 %v5044_v7, %v7537_v23  ;;  %5471 = vmatprep.mubr.bf16.mxu0 %v3463_v60  ;;  %v4973_v46 = vpop.f32.mrb[79].mxu1  ;;  %v3469_v23 = vld [vmem:[#allocation4 + $0x130] sm:$0xff] }
 0x24e   : > { %v7623_v5 = vadd.f32 %v4973_v46, %v4972_v56 }
 0x24f   : > { %v5045_v63 = vpop.f32.mrb[36].mxu0 }
 0x250   : > { %v5046_v42 = vpop.f32.mrb[37].mxu0 }
 0x251   : > { %v5047_v11 = vadd.f32 %v5046_v42, %v5045_v63  ;;  %v5048_v39 = vpop.f32.mrb[38].mxu0 }
 0x252   : > { %v5049_v2 = vpop.f32.mrb[39].mxu0  ;;  %v4975_v1 = vpop.f32.mrb[80].mxu1 }
 0x253   : > { %v7626_v62 = vadd.f32 %v5047_v11, %v7545_v40  ;;  %v5050_v15 = vadd.f32 %v5049_v2, %v5048_v39  ;;  %v4976_v38 = vpop.f32.mrb[81].mxu1 }
 0x254   : > { %5472 = vmatmul.mubr.bf16.gmra.mrb[16].mxu0 %v3466_v49  ;;  %v7631_v8 = vadd.f32 %v4976_v38, %v4975_v1  ;;  %v4978_v50 = vpop.f32.mrb[82].mxu1 }
 0x255   : > { %v7629_v33 = vadd.f32 %v5050_v15, %v7548_v20  ;;  %5475 = vmatprep.mubr.bf16.mxu0 %v3469_v23  ;;  %v4979_v61 = vpop.f32.mrb[83].mxu1 }
 0x256   : > { %v7633_v37 = vadd.f32 %v4979_v61, %v4978_v50 }
 0x257   : > { %v5051_v51 = vpop.f32.mrb[40].mxu0 }
 0x258   : > { %v5052_v29 = vpop.f32.mrb[41].mxu0 }
 0x259   : > { %v5053_v40 = vadd.f32 %v5052_v29, %v5051_v51  ;;  %v5054_v32 = vpop.f32.mrb[42].mxu0 }
 0x25a   : > { %v5055_v59 = vpop.f32.mrb[43].mxu0  ;;  %v4981_v31 = vpop.f32.mrb[84].mxu1 }
 0x25b   : > { %v7636_v12 = vadd.f32 %v5053_v40, %v7559_v45  ;;  %v5056_v55 = vadd.f32 %v5055_v59, %v5054_v32  ;;  %v4982_v20 = vpop.f32.mrb[85].mxu1 }
 0x25c   : > { %5476 = vmatmul.mubr.bf16.gmra.mrb[20].mxu0 %v3472_v17  ;;  %v7642_v14 = vadd.f32 %v4982_v20, %v4981_v31  ;;  %v4984_v41 = vpop.f32.mrb[86].mxu1 }
 0x25d   : > { %v7639_v18 = vadd.f32 %v5056_v55, %v7562_v25  ;;  %5479 = vmatprep.mubr.bf16.mxu0 %v7438_v13  ;;  %v4985_v54 = vpop.f32.mrb[87].mxu1  ;;  %v3481_v25 = vld [vmem:[#allocation4 + $0x190] sm:$0xff] }
 0x25e   : > { %v7644_v6 = vadd.f32 %v4985_v54, %v4984_v41 }
 0x25f   : > { %v5057_v26 = vpop.f32.mrb[44].mxu0 }
 0x260   : > { %v5058_v7 = vpop.f32.mrb[45].mxu0 }
 0x261   : > { %v5059_v45 = vadd.f32 %v5058_v7, %v5057_v26  ;;  %v5060_v58 = vpop.f32.mrb[46].mxu0 }
 0x262   : > { %v5061_v35 = vpop.f32.mrb[47].mxu0  ;;  %v4987_v56 = vpop.f32.mrb[88].mxu1 }
 0x263   : > { %v7647_v60 = vadd.f32 %v5059_v45, %v7573_v28  ;;  %v5062_v30 = vadd.f32 %v5061_v35, %v5060_v58  ;;  %v4988_v13 = vpop.f32.mrb[89].mxu1 }
 0x264   : > { %5480 = vmatmul.mubr.bf16.gmra.mrb[24].mxu0 %v7446_v22  ;;  %v7653_v63 = vadd.f32 %v4988_v13, %v4987_v56  ;;  %v4990_v42 = vpop.f32.mrb[90].mxu1 }
 0x265   : > { %v7651_v46 = vadd.f32 %v5062_v30, %v7576_v0  ;;  %5483 = vmatprep.mubr.bf16.mxu0 %v3481_v25  ;;  %v4991_v11 = vpop.f32.mrb[91].mxu1 }
 0x266   : > { %v7655_v2 = vadd.f32 %v4991_v11, %v4990_v42 }
 0x267   : > { %v5063_v39 = vpop.f32.mrb[48].mxu0 }
 0x268   : > { %v5064_v15 = vpop.f32.mrb[49].mxu0 }
 0x269   : > { %v5065_v28 = vadd.f32 %v5064_v15, %v5063_v39  ;;  %v5066_v49 = vpop.f32.mrb[50].mxu0 }
 0x26a   : > { %v5067_v1 = vpop.f32.mrb[51].mxu0  ;;  %v4993_v38 = vpop.f32.mrb[92].mxu1 }
 0x26b   : > { %v7658_v23 = vadd.f32 %v5065_v28, %v7581_v52  ;;  %v5068_v22 = vadd.f32 %v5067_v1, %v5066_v49  ;;  %v4994_v0 = vpop.f32.mrb[93].mxu1 }
 0x26c   : > { %5484 = vmatmul.mubr.bf16.gmra.mrb[28].mxu0 %v7372_v53  ;;  %v7664_v61 = vadd.f32 %v4994_v0, %v4993_v38  ;;  %v4996_v51 = vpop.f32.mrb[94].mxu1 }
 0x26d   : > { %v7662_v50 = vadd.f32 %v5068_v22, %v7584_v44  ;;  %v4997_v29 = vpop.f32.mrb[95].mxu1 }
 0x26e   : > { %v7666_v32 = vadd.f32 %v4997_v29, %v4996_v51 }
 0x26f   : > { %v5069_v40 = vpop.f32.mrb[52].mxu0 }
 0x270   : > { %v5070_v59 = vpop.f32.mrb[53].mxu0 }
 0x271   : > { %v5071_v55 = vadd.f32 %v5070_v59, %v5069_v40  ;;  %v5072_v17 = vpop.f32.mrb[54].mxu0 }
 0x272   : > { %v5073_v52 = vpop.f32.mrb[55].mxu0  ;;  %v5175_v53 = vpop.f32.mrb[96].mxu1 }
 0x273   : > { %v7669_v31 = vadd.f32 %v5071_v55, %v7588_v48  ;;  %v5074_v20 = vadd.f32 %v5073_v52, %v5072_v17  ;;  %v5176_v41 = vpop.f32.mrb[97].mxu1 }
 0x274   : > { %v5177_v54 = vadd.f32 %v5176_v41, %v5175_v53  ;;  %v5178_v26 = vpop.f32.mrb[98].mxu1 }
 0x275   : > { %v7672_v44 = vadd.f32 %v5074_v20, %v7590_v34  ;;  %v5179_v7 = vpop.f32.mrb[99].mxu1 }
 0x276   : > { %v5180_v58 = vadd.f32 %v5179_v7, %v5178_v26  ;;  %v7675_v35 = vadd.f32 %v7616_v47, %v5177_v54 }
 0x277   : > { %v5075_v45 = vpop.f32.mrb[56].mxu0 }
 0x278   : > { %v5076_v30 = vpop.f32.mrb[57].mxu0  ;;  %v7678_v48 = vadd.f32 %v7619_v9, %v5180_v58 }
 0x279   : > { %v5077_v56 = vadd.f32 %v5076_v30, %v5075_v45  ;;  %v5078_v25 = vpop.f32.mrb[58].mxu0 }
 0x27a   : > { %v5079_v13 = vpop.f32.mrb[59].mxu0  ;;  %v5181_v11 = vpop.f32.mrb[100].mxu1 }
 0x27b   : > { %v7681_v42 = vadd.f32 %v5077_v56, %v7594_v43  ;;  %v5080_v34 = vadd.f32 %v5079_v13, %v5078_v25  ;;  %v5182_v39 = vpop.f32.mrb[101].mxu1 }
 0x27c   : > { %v5183_v28 = vadd.f32 %v5182_v39, %v5181_v11  ;;  %v5184_v49 = vpop.f32.mrb[102].mxu1 }
 0x27d   : > { %v7684_v15 = vadd.f32 %v5080_v34, %v7596_v21  ;;  %v5185_v47 = vpop.f32.mrb[103].mxu1 }
 0x27e   : > { %v5186_v22 = vadd.f32 %v5185_v47, %v5184_v49  ;;  %v7687_v38 = vadd.f32 %v7626_v62, %v5183_v28 }
 0x27f   : > { %v5081_v1 = vpop.f32.mrb[60].mxu0 }
 0x280   : > { %v5082_v9 = vpop.f32.mrb[61].mxu0  ;;  %v7690_v43 = vadd.f32 %v7629_v33, %v5186_v22 }
 0x281   : > { %v5083_v0 = vadd.f32 %v5082_v9, %v5081_v1  ;;  %v5084_v51 = vpop.f32.mrb[62].mxu0 }
 0x282   : > { %v5085_v29 = vpop.f32.mrb[63].mxu0  ;;  %v5187_v59 = vpop.f32.mrb[104].mxu1 }
 0x283   : > { %v7693_v40 = vadd.f32 %v5083_v0, %v7599_v27  ;;  %v5086_v21 = vadd.f32 %v5085_v29, %v5084_v51  ;;  %v5188_v55 = vpop.f32.mrb[105].mxu1 }
 0x284   : > { %v5189_v52 = vadd.f32 %v5188_v55, %v5187_v59  ;;  %v5190_v20 = vpop.f32.mrb[106].mxu1 }
 0x285   : > { %v7696_v17 = vadd.f32 %v5086_v21, %v7601_v19  ;;  %v5191_v62 = vpop.f32.mrb[107].mxu1 }
 0x286   : > { %v5192_v41 = vadd.f32 %v5191_v62, %v5190_v20  ;;  %v7699_v54 = vadd.f32 %v7636_v12, %v5189_v52 }
 0x287   : > { %v5087_v53 = vpop.f32.mrb[64].mxu0 }
 0x288   : > { %v5088_v33 = vpop.f32.mrb[65].mxu0  ;;  %v7702_v27 = vadd.f32 %v7639_v18, %v5192_v41 }
 0x289   : > { %v5089_v26 = vadd.f32 %v5088_v33, %v5087_v53  ;;  %v5090_v7 = vpop.f32.mrb[66].mxu0 }
 0x28a   : > { %v5091_v45 = vpop.f32.mrb[67].mxu0  ;;  %v5193_v30 = vpop.f32.mrb[108].mxu1 }
 0x28b   : > { %v7705_v58 = vadd.f32 %v5089_v26, %v7603_v36  ;;  %v5092_v19 = vadd.f32 %v5091_v45, %v5090_v7  ;;  %v5194_v56 = vpop.f32.mrb[109].mxu1 }
 0x28c   : > { %v5195_v13 = vadd.f32 %v5194_v56, %v5193_v30  ;;  %v5196_v34 = vpop.f32.mrb[110].mxu1 }
 0x28d   : > { %v7708_v25 = vadd.f32 %v5092_v19, %v7605_v24  ;;  %v5197_v12 = vpop.f32.mrb[111].mxu1 }
 0x28e   : > { %v5198_v39 = vadd.f32 %v5197_v12, %v5196_v34  ;;  %v7711_v28 = vadd.f32 %v7647_v60, %v5195_v13 }
 0x28f   : > { %v5093_v11 = vpop.f32.mrb[68].mxu0 }
 0x290   : > { %v5094_v18 = vpop.f32.mrb[69].mxu0  ;;  %v7714_v36 = vadd.f32 %v7651_v46, %v5198_v39 }
 0x291   : > { %v5095_v49 = vadd.f32 %v5094_v18, %v5093_v11  ;;  %v5096_v47 = vpop.f32.mrb[70].mxu0 }
 0x292   : > { %v5097_v1 = vpop.f32.mrb[71].mxu0  ;;  %v5199_v9 = vpop.f32.mrb[112].mxu1 }
 0x293   : > { %v7717_v22 = vadd.f32 %v5095_v49, %v7607_v3  ;;  %v5098_v24 = vadd.f32 %v5097_v1, %v5096_v47  ;;  %v5200_v0 = vpop.f32.mrb[113].mxu1 }
 0x294   : > { %v5201_v29 = vadd.f32 %v5200_v0, %v5199_v9  ;;  %v5202_v21 = vpop.f32.mrb[114].mxu1 }
 0x295   : > { %v7720_v51 = vadd.f32 %v5098_v24, %v7609_v4  ;;  %v5203_v60 = vpop.f32.mrb[115].mxu1 }
 0x296   : > { %v5204_v55 = vadd.f32 %v5203_v60, %v5202_v21  ;;  %v7723_v52 = vadd.f32 %v7658_v23, %v5201_v29 }
 0x297   : > { %v5099_v59 = vpop.f32.mrb[72].mxu0 }
 0x298   : > { %v5100_v46 = vpop.f32.mrb[73].mxu0  ;;  %v7726_v3 = vadd.f32 %v7662_v50, %v5204_v55 }
 0x299   : > { %v5101_v20 = vadd.f32 %v5100_v46, %v5099_v59  ;;  %v5102_v62 = vpop.f32.mrb[74].mxu0 }
 0x29a   : > { %v5103_v53 = vpop.f32.mrb[75].mxu0  ;;  %v5205_v33 = vpop.f32.mrb[116].mxu1 }
 0x29b   : > { %v7729_v41 = vadd.f32 %v5101_v20, %v7611_v10  ;;  %v5104_v4 = vadd.f32 %v5103_v53, %v5102_v62  ;;  %v5206_v26 = vpop.f32.mrb[117].mxu1 }
 0x29c   : > { %v5207_v45 = vadd.f32 %v5206_v26, %v5205_v33  ;;  %v5208_v19 = vpop.f32.mrb[118].mxu1 }
 0x29d   : > { %v7732_v7 = vadd.f32 %v5104_v4, %v7613_v16  ;;  %v5209_v23 = vpop.f32.mrb[119].mxu1 }
 0x29e   : > { %v5210_v56 = vadd.f32 %v5209_v23, %v5208_v19  ;;  %v7735_v13 = vadd.f32 %v7669_v31, %v5207_v45 }
 0x29f   : > { %v5105_v30 = vpop.f32.mrb[76].mxu0 }
 0x2a0   : > { %v5106_v50 = vpop.f32.mrb[77].mxu0  ;;  %v7738_v10 = vadd.f32 %v7672_v44, %v5210_v56 }
 0x2a1   : > { %v5107_v34 = vadd.f32 %v5106_v50, %v5105_v30  ;;  %v5108_v12 = vpop.f32.mrb[78].mxu0 }
 0x2a2   : > { %v5109_v11 = vpop.f32.mrb[79].mxu0  ;;  %v5211_v18 = vpop.f32.mrb[120].mxu1 }
 0x2a3   : > { %v7741_v39 = vadd.f32 %v5107_v34, %v7621_v57  ;;  %v5110_v16 = vadd.f32 %v5109_v11, %v5108_v12  ;;  %v5212_v49 = vpop.f32.mrb[121].mxu1 }
 0x2a4   : > { %v5213_v1 = vadd.f32 %v5212_v49, %v5211_v18  ;;  %v5214_v24 = vpop.f32.mrb[122].mxu1 }
 0x2a5   : > { %v7744_v47 = vadd.f32 %v5110_v16, %v7623_v5  ;;  %v5215_v31 = vpop.f32.mrb[123].mxu1 }
 0x2a6   : > { %v5216_v0 = vadd.f32 %v5215_v31, %v5214_v24  ;;  %v7747_v29 = vadd.f32 %v7681_v42, %v5213_v1 }
 0x2a7   : > { %v5111_v9 = vpop.f32.mrb[80].mxu0 }
 0x2a8   : > { %v5112_v44 = vpop.f32.mrb[81].mxu0  ;;  %v7750_v57 = vadd.f32 %v7684_v15, %v5216_v0 }
 0x2a9   : > { %v5113_v21 = vadd.f32 %v5112_v44, %v5111_v9  ;;  %v5114_v60 = vpop.f32.mrb[82].mxu0 }
 0x2aa   : > { %v5115_v59 = vpop.f32.mrb[83].mxu0  ;;  %v5217_v46 = vpop.f32.mrb[124].mxu1 }
 0x2ab   : > { %v7753_v55 = vadd.f32 %v5113_v21, %v7631_v8  ;;  %v5116_v5 = vadd.f32 %v5115_v59, %v5114_v60  ;;  %v5218_v20 = vpop.f32.mrb[125].mxu1 }
 0x2ac   : > { %v5219_v53 = vadd.f32 %v5218_v20, %v5217_v46  ;;  %v5220_v4 = vpop.f32.mrb[126].mxu1 }
 0x2ad   : > { %v7756_v62 = vadd.f32 %v5116_v5, %v7633_v37  ;;  %v5221_v42 = vpop.f32.mrb[127].mxu1 }
 0x2ae   : > { %v5222_v26 = vadd.f32 %v5221_v42, %v5220_v4  ;;  %v7759_v45 = vadd.f32 %v7693_v40, %v5219_v53 }
 0x2af   : > { %v5117_v33 = vpop.f32.mrb[84].mxu0 }
 0x2b0   : > { %v5118_v15 = vpop.f32.mrb[85].mxu0  ;;  %v7762_v8 = vadd.f32 %v7696_v17, %v5222_v26 }
 0x2b1   : > { %v5119_v19 = vadd.f32 %v5118_v15, %v5117_v33  ;;  %v5120_v23 = vpop.f32.mrb[86].mxu0 }
 0x2b2   : > { %v5121_v30 = vpop.f32.mrb[87].mxu0  ;;  %v5223_v50 = vpop.f32.mrb[128].mxu1 }
 0x2b3   : > { %v7765_v56 = vadd.f32 %v5119_v19, %v7642_v14  ;;  %v5122_v37 = vadd.f32 %v5121_v30, %v5120_v23  ;;  %v5224_v34 = vpop.f32.mrb[129].mxu1 }
 0x2b4   : > { %v5225_v11 = vadd.f32 %v5224_v34, %v5223_v50  ;;  %v5226_v16 = vpop.f32.mrb[130].mxu1 }
 0x2b5   : > { %v5565_v12 = vadd.f32 %v5122_v37, %v7644_v6  ;;  %v5227_v18 = vpop.f32.mrb[131].mxu1 }
 0x2b6   : > { %v5228_v49 = vadd.f32 %v5227_v18, %v5226_v16  ;;  %v7769_v1 = vadd.f32 %v7705_v58, %v5225_v11 }
 0x2b7   : > { %v5123_v40 = vpop.f32.mrb[88].mxu0 }
 0x2b8   : > { %v5124_v24 = vpop.f32.mrb[89].mxu0  ;;  %v7772_v9 = vadd.f32 %v7708_v25, %v5228_v49 }
 0x2b9   : > { %v5125_v17 = vadd.f32 %v5124_v24, %v5123_v40  ;;  %v5126_v31 = vpop.f32.mrb[90].mxu0 }
 0x2ba   : > { %v5127_v14 = vpop.f32.mrb[91].mxu0  ;;  %v5229_v21 = vpop.f32.mrb[132].mxu1 }
 0x2bb   : > { %v5574_v0 = vadd.f32 %v5125_v17, %v7653_v63  ;;  %v5128_v44 = vadd.f32 %v5127_v14, %v5126_v31  ;;  %v5230_v6 = vpop.f32.mrb[133].mxu1 }
 0x2bc   : > { %v5231_v59 = vadd.f32 %v5230_v6, %v5229_v21  ;;  %v5232_v5 = vpop.f32.mrb[134].mxu1 }
 0x2bd   : > { %v5580_v60 = vadd.f32 %v5128_v44, %v7655_v2  ;;  %v5233_v46 = vpop.f32.mrb[135].mxu1 }
 0x2be   : > { %v5234_v58 = vadd.f32 %v5233_v46, %v5232_v5  ;;  %v7777_v53 = vadd.f32 %v7717_v22, %v5231_v59 }
 0x2bf   : > { %v5129_v20 = vpop.f32.mrb[92].mxu0 }
 0x2c0   : > { %v5130_v4 = vpop.f32.mrb[93].mxu0  ;;  %v7780_v33 = vadd.f32 %v7720_v51, %v5234_v58 }
 0x2c1   : > { %v5131_v42 = vadd.f32 %v5130_v4, %v5129_v20  ;;  %v5132_v25 = vpop.f32.mrb[94].mxu0 }
 0x2c2   : > { %v5133_v63 = vpop.f32.mrb[95].mxu0  ;;  %v5235_v19 = vpop.f32.mrb[136].mxu1 }
 0x2c3   : > { %v5571_v26 = vadd.f32 %v5131_v42, %v7664_v61  ;;  %v5134_v15 = vadd.f32 %v5133_v63, %v5132_v25  ;;  %v5236_v2 = vpop.f32.mrb[137].mxu1 }
 0x2c4   : > { %v5237_v30 = vadd.f32 %v5236_v2, %v5235_v19  ;;  %v5238_v37 = vpop.f32.mrb[138].mxu1 }
 0x2c5   : > { %v5577_v23 = vadd.f32 %v5134_v15, %v7666_v32  ;;  %v5239_v50 = vpop.f32.mrb[139].mxu1 }
 0x2c6   : > { %v5240_v34 = vadd.f32 %v5239_v50, %v5238_v37  ;;  %v7785_v22 = vadd.f32 %v7729_v41, %v5237_v30 }
 0x2c8   : > { %v7788_v11 = vadd.f32 %v7732_v7, %v5240_v34 }
 0x2ca   : > { %v5241_v51 = vpop.f32.mrb[140].mxu1 }
 0x2cb   : > { %v5242_v16 = vpop.f32.mrb[141].mxu1 }
 0x2cc   : > { %v5243_v18 = vadd.f32 %v5242_v16, %v5241_v51  ;;  %v5244_v40 = vpop.f32.mrb[142].mxu1 }
 0x2cd   : > { %v5245_v61 = vpop.f32.mrb[143].mxu1 }
 0x2ce   : > { %v5246_v49 = vadd.f32 %v5245_v61, %v5244_v40  ;;  %v7791_v24 = vadd.f32 %v7741_v39, %v5243_v18  ;;  %v5753_v18 = vld [vmem:[%s5874_s14 + $0x8] sm:$0xff]   ;;  %v5754_v40 = vld [vmem:[%s5874_s14] sm:$0xff]  }
 0x2cf   : > { %v4050_v61 = vunpack.c.l.bf16 %v5753_v18 }
 0x2d0   : > { %v7794_v32 = vadd.f32 %v7744_v47, %v5246_v49 }
 0x2d2   : > { %v5247_v17 = vpop.f32.mrb[144].mxu1 }
 0x2d3   : > { %v5248_v31 = vpop.f32.mrb[145].mxu1 }
 0x2d4   : > { %v5249_v14 = vadd.f32 %v5248_v31, %v5247_v17  ;;  %v5250_v41 = vpop.f32.mrb[146].mxu1  ;;  %v4051_v17 = vunpack.c.h.bf16 %v5753_v18  ;;  %v4048_v31 = vunpack.c.l.bf16 %v5754_v40 }
 0x2d5   : > { %v5251_v44 = vpop.f32.mrb[147].mxu1 }
 0x2d6   : > { %v5252_v21 = vadd.f32 %v5251_v44, %v5250_v41  ;;  %v7797_v7 = vadd.f32 %v7753_v55, %v5249_v14  ;;  %v4049_v14 = vunpack.c.h.bf16 %v5754_v40 }
 0x2d8   : > { %v7800_v6 = vadd.f32 %v7756_v62, %v5252_v21  ;;  %v5755_v21 = vld [vmem:[%s5874_s14 + $0x18] sm:$0xff]  }
 0x2d9   : > { %v4054_v18 = vunpack.c.l.bf16 %v5755_v21 }
 0x2da   : > { %v5253_v59 = vpop.f32.mrb[148].mxu1 }
 0x2db   : > { %v5254_v5 = vpop.f32.mrb[149].mxu1 }
 0x2dc   : > { %v5255_v46 = vadd.f32 %v5254_v5, %v5253_v59  ;;  %v5256_v39 = vpop.f32.mrb[150].mxu1  ;;  %v5756_v59 = vld [vmem:[%s5874_s14 + $0x10] sm:$0xff]   ;;  %v5757_v5 = vld [vmem:[%s5874_s14 + $0x28] sm:$0xff]  }
 0x2dd   : > { %v5257_v20 = vpop.f32.mrb[151].mxu1 }
 0x2de   : > { %v5258_v58 = vadd.f32 %v5257_v20, %v5256_v39  ;;  %v7803_v47 = vadd.f32 %v7765_v56, %v5255_v46  ;;  %v5758_v46 = vld [vmem:[%s5874_s14 + $0x20] sm:$0xff]   ;;  %v7829_v39 = vld [vmem:[%s5874_s14 + $0x30] sm:$0xff]   ;;  %v7832_v20 = vld [vmem:[%s5874_s14 + $0x48] sm:$0xff]  }
 0x2e0   : > { %v7805_v4 = vadd.f32 %v5565_v12, %v5258_v58  ;;  %v7835_v58 = vld [vmem:[%s5874_s14 + $0x40] sm:$0xff]  }
 0x2e2   : > { %v5259_v42 = vpop.f32.mrb[152].mxu1 }
 0x2e3   : > { %v5260_v25 = vpop.f32.mrb[153].mxu1 }
 0x2e4   : > { %v5261_v55 = vadd.f32 %v5260_v25, %v5259_v42  ;;  %v5262_v63 = vpop.f32.mrb[154].mxu1  ;;  %v7838_v25 = vld [vmem:[%s5874_s14 + $0x58] sm:$0xff]  }
 0x2e5   : > { %v5263_v15 = vpop.f32.mrb[155].mxu1 }
 0x2e6   : > { %v5264_v62 = vadd.f32 %v5263_v15, %v5262_v63  ;;  %v7807_v19 = vadd.f32 %v5574_v0, %v5261_v55  ;;  %v7841_v55 = vld [vmem:[%s5874_s14 + $0x50] sm:$0xff]  }
 0x2e8   : > { %v7809_v2 = vadd.f32 %v5580_v60, %v5264_v62  ;;  %v7854_v62 = vld [vmem:[%s5874_s14 + $0x60] sm:$0xff]  }
 0x2ea   : > { %v5265_v30 = vpop.f32.mrb[156].mxu1 }
 0x2eb   : > { %v5266_v37 = vpop.f32.mrb[157].mxu1 }
 0x2ec   : > { %v5267_v50 = vadd.f32 %v5266_v37, %v5265_v30  ;;  %v5268_v34 = vpop.f32.mrb[158].mxu1  ;;  %v7857_v30 = vld [vmem:[%s5874_s14 + $0x78] sm:$0xff]   ;;  %v7860_v37 = vld [vmem:[%s5874_s14 + $0x70] sm:$0xff]  }
 0x2ed   : > { %v5269_v56 = vpop.f32.mrb[159].mxu1 }
 0x2ee   : > { %v5270_v51 = vadd.f32 %v5269_v56, %v5268_v34  ;;  %v7811_v12 = vadd.f32 %v5571_v26, %v5267_v50 }
 0x2f0   : > { %v7813_v16 = vadd.f32 %v5577_v23, %v5270_v51 }
 0x307   : > { %v5457_v0 = vpop.f32.mrb[0].mxu0 }
 0x308   : > { %v5489_v60 = vadd.f32 %v7687_v38, %v5457_v0  ;;  %v3873_v49 = vpop.f32.mrb[1].mxu0  ;;  %v4055_v0 = vunpack.c.h.bf16 %v5755_v21 }
 0x309   : > { %v5492_v26 = vadd.f32 %v7675_v35, %v3873_v49  ;;  %v5458_v23 = vpop.f32.mrb[2].mxu0  ;;  %v7826_v35 = vld [vmem:[%s5874_s14 + $0x38] sm:$0xff]  }
 0x30a   : > { %v5495_v41 = vadd.f32 %v7690_v43, %v5458_v23  ;;  %v3876_v44 = vpop.f32.mrb[3].mxu0  ;;  %v4082_v43 = vadd.f32 %v5489_v60, %v4050_v61  ;;  %v4052_v61 = vunpack.c.l.bf16 %v5756_v59 }
 0x30b   : > { %v5498_v38 = vadd.f32 %v7678_v48, %v3876_v44  ;;  %v7844_v48 = vld [vmem:[%s5874_s14 + $0x68] sm:$0xff]   ;;  %v4080_v63 = vadd.f32 %v5492_v26, %v4048_v31 }
 0x30c   : > { %v4083_v42 = vadd.f32 %v5495_v41, %v4051_v17  ;;  %v4053_v17 = vunpack.c.h.bf16 %v5756_v59  ;;  %v4059_v59 = vunpack.c.h.bf16 %v5757_v5 }
 0x30d   : > { %v4081_v15 = vadd.f32 %v5498_v38, %v4049_v14 }
 0x30e   : > { %v4761_v50 = vpack.c.bf16 %v4083_v42, %v4082_v43  ;;  %v4058_v42 = vunpack.c.l.bf16 %v5757_v5 }
 0x30f   : > { %v4756_v34 = vpack.c.bf16 %v4081_v15, %v4080_v63  ;;  %v5461_v56 = vpop.f32.mrb[4].mxu0 }
 0x310   : > { %v5501_v51 = vadd.f32 %v7711_v28, %v5461_v56  ;;  %v3889_v40 = vpop.f32.mrb[5].mxu0  ;;  %4848 = vst [vmem:[%s7851_s9 + $0x8] sm:$0xff] %v4761_v50  }
 0x311   : > { %v5504_v60 = vadd.f32 %v7699_v54, %v3889_v40  ;;  %v5462_v49 = vpop.f32.mrb[6].mxu0  ;;  %4757 = vst [vmem:[%s7851_s9] sm:$0xff] %v4756_v34   ;;  %v4057_v34 = vunpack.c.h.bf16 %v5758_v46 }
 0x312   : > { %v5507_v26 = vadd.f32 %v7714_v36, %v5462_v49  ;;  %v3892_v31 = vpop.f32.mrb[7].mxu0  ;;  %v4086_v14 = vadd.f32 %v5501_v51, %v4054_v18  ;;  %v4056_v36 = vunpack.c.l.bf16 %v5758_v46  ;;  %v4062_v49 = vunpack.c.l.bf16 %v7826_v35 }
 0x313   : > { %v5510_v23 = vadd.f32 %v7702_v27, %v3892_v31  ;;  %v4084_v28 = vadd.f32 %v5504_v60, %v4052_v61  ;;  %v4061_v31 = vunpack.c.h.bf16 %v7829_v39 }
 0x314   : > { %v4087_v41 = vadd.f32 %v5507_v26, %v4055_v0 }
 0x315   : > { %v4085_v44 = vadd.f32 %v5510_v23, %v4053_v17  ;;  %v4063_v17 = vunpack.c.h.bf16 %v7826_v35 }
 0x316   : > { %v4771_v38 = vpack.c.bf16 %v4087_v41, %v4086_v14 }
 0x317   : > { %v4766_v21 = vpack.c.bf16 %v4085_v44, %v4084_v28  ;;  %v5465_v43 = vpop.f32.mrb[8].mxu0 }
 0x318   : > { %v5513_v54 = vadd.f32 %v7735_v13, %v5465_v43  ;;  %v3905_v63 = vpop.f32.mrb[9].mxu0  ;;  %4850 = vst [vmem:[%s7851_s9 + $0x18] sm:$0xff] %v4771_v38  }
 0x319   : > { %v5516_v15 = vadd.f32 %v7723_v52, %v3905_v63  ;;  %v5466_v50 = vpop.f32.mrb[10].mxu0  ;;  %4849 = vst [vmem:[%s7851_s9 + $0x10] sm:$0xff] %v4766_v21  }
 0x31a   : > { %v5519_v27 = vadd.f32 %v7738_v10, %v5466_v50  ;;  %v3908_v56 = vpop.f32.mrb[11].mxu0  ;;  %v4090_v18 = vadd.f32 %v5513_v54, %v4058_v42  ;;  %v4066_v54 = vunpack.c.l.bf16 %v7832_v20  ;;  %v4067_v42 = vunpack.c.h.bf16 %v7832_v20 }
 0x31b   : > { %v5522_v51 = vadd.f32 %v7726_v3, %v3908_v56  ;;  %v4088_v13 = vadd.f32 %v5516_v15, %v4056_v36  ;;  %v4060_v3 = vunpack.c.l.bf16 %v7829_v39 }
 0x31c   : > { %v4091_v40 = vadd.f32 %v5519_v27, %v4059_v59  ;;  %v4065_v59 = vunpack.c.h.bf16 %v7835_v58 }
 0x31d   : > { %v4089_v0 = vadd.f32 %v5522_v51, %v4057_v34 }
 0x31e   : > { %v4781_v60 = vpack.c.bf16 %v4091_v40, %v4090_v18  ;;  %v4070_v40 = vunpack.c.l.bf16 %v7838_v25 }
 0x31f   : > { %v4776_v5 = vpack.c.bf16 %v4089_v0, %v4088_v13  ;;  %v5469_v61 = vpop.f32.mrb[12].mxu0  ;;  %v4071_v13 = vunpack.c.h.bf16 %v7838_v25 }
 0x320   : > { %v5525_v52 = vadd.f32 %v7759_v45, %v5469_v61  ;;  %v3921_v46 = vpop.f32.mrb[13].mxu0  ;;  %4852 = vst [vmem:[%s7851_s9 + $0x28] sm:$0xff] %v4781_v60   ;;  %v4069_v60 = vunpack.c.h.bf16 %v7841_v55 }
 0x321   : > { %v5528_v10 = vadd.f32 %v7747_v29, %v3921_v46  ;;  %v5470_v26 = vpop.f32.mrb[14].mxu0  ;;  %4851 = vst [vmem:[%s7851_s9 + $0x20] sm:$0xff] %v4776_v5  }
 0x322   : > { %v5531_v23 = vadd.f32 %v7762_v8, %v5470_v26  ;;  %v3924_v14 = vpop.f32.mrb[15].mxu0  ;;  %v4094_v41 = vadd.f32 %v5525_v52, %v4062_v49  ;;  %v4074_v26 = vunpack.c.l.bf16 %v7844_v48 }
 0x323   : > { %v5534_v45 = vadd.f32 %v7750_v57, %v3924_v14  ;;  %v4092_v44 = vadd.f32 %v5528_v10, %v4060_v3  ;;  %v4064_v57 = vunpack.c.l.bf16 %v7835_v58  ;;  %v4073_v14 = vunpack.c.h.bf16 %v7854_v62 }
 0x324   : > { %v4095_v28 = vadd.f32 %v5531_v23, %v4063_v17 }
 0x325   : > { %v4093_v35 = vadd.f32 %v5534_v45, %v4061_v31  ;;  %v4075_v31 = vunpack.c.h.bf16 %v7844_v48 }
 0x326   : > { %v4791_v38 = vpack.c.bf16 %v4095_v28, %v4094_v41 }
 0x327   : > { %v4786_v21 = vpack.c.bf16 %v4093_v35, %v4092_v44  ;;  %v5473_v29 = vpop.f32.mrb[16].mxu0 }
 0x328   : > { %v5537_v43 = vadd.f32 %v7777_v53, %v5473_v29  ;;  %v3937_v39 = vpop.f32.mrb[17].mxu0  ;;  %4854 = vst [vmem:[%s7851_s9 + $0x38] sm:$0xff] %v4791_v38  }
 0x329   : > { %v5540_v8 = vadd.f32 %v7769_v1, %v3937_v39  ;;  %v5474_v63 = vpop.f32.mrb[18].mxu0  ;;  %4853 = vst [vmem:[%s7851_s9 + $0x30] sm:$0xff] %v4786_v21  }
 0x32a   : > { %v5543_v15 = vadd.f32 %v7780_v33, %v5474_v63  ;;  %v3940_v36 = vpop.f32.mrb[19].mxu0  ;;  %v4098_v50 = vadd.f32 %v5537_v43, %v4066_v54  ;;  %v4078_v43 = vunpack.c.l.bf16 %v7857_v30 }
 0x32b   : > { %v5546_v53 = vadd.f32 %v7772_v9, %v3940_v36  ;;  %v4096_v27 = vadd.f32 %v5540_v8, %v4064_v57  ;;  %v4068_v9 = vunpack.c.l.bf16 %v7841_v55 }
 0x32c   : > { %v4099_v34 = vadd.f32 %v5543_v15, %v4067_v42  ;;  %v4077_v42 = vunpack.c.h.bf16 %v7860_v37 }
 0x32d   : > { %v4097_v20 = vadd.f32 %v5546_v53, %v4065_v59 }
 0x32e   : > { %v4801_v56 = vpack.c.bf16 %v4099_v34, %v4098_v50 }
 0x32f   : > { %v4796_v51 = vpack.c.bf16 %v4097_v20, %v4096_v27  ;;  %v5477_v1 = vpop.f32.mrb[20].mxu0 }
 0x330   : > { %v5549_v18 = vadd.f32 %v7791_v24, %v5477_v1  ;;  %v3953_v58 = vpop.f32.mrb[21].mxu0  ;;  %4856 = vst [vmem:[%s7851_s9 + $0x48] sm:$0xff] %v4801_v56  }
 0x331   : > { %v5552_v33 = vadd.f32 %v7785_v22, %v3953_v58  ;;  %v5478_v0 = vpop.f32.mrb[22].mxu0  ;;  %4855 = vst [vmem:[%s7851_s9 + $0x40] sm:$0xff] %v4796_v51  }
 0x332   : > { %v5555_v5 = vadd.f32 %v7794_v32, %v5478_v0  ;;  %v3956_v61 = vpop.f32.mrb[23].mxu0  ;;  %v4102_v52 = vadd.f32 %v5549_v18, %v4070_v40 }
 0x333   : > { %v5558_v24 = vadd.f32 %v7788_v11, %v3956_v61  ;;  %v4100_v46 = vadd.f32 %v5552_v33, %v4068_v9  ;;  %v4072_v11 = vunpack.c.l.bf16 %v7854_v62 }
 0x334   : > { %v4103_v49 = vadd.f32 %v5555_v5, %v4071_v13 }
 0x335   : > { %v4101_v25 = vadd.f32 %v5558_v24, %v4069_v60 }
 0x336   : > { %v4811_v17 = vpack.c.bf16 %v4103_v49, %v4102_v52 }
 0x337   : > { %v4806_v10 = vpack.c.bf16 %v4101_v25, %v4100_v46  ;;  %v5481_v22 = vpop.f32.mrb[24].mxu0 }
 0x338   : > { %v5561_v3 = vadd.f32 %v7803_v47, %v5481_v22  ;;  %v3969_v55 = vpop.f32.mrb[25].mxu0  ;;  %4858 = vst [vmem:[%s7851_s9 + $0x58] sm:$0xff] %v4811_v17  }
 0x339   : > { %v5564_v32 = vadd.f32 %v7797_v7, %v3969_v55  ;;  %v5482_v23 = vpop.f32.mrb[26].mxu0  ;;  %4857 = vst [vmem:[%s7851_s9 + $0x50] sm:$0xff] %v4806_v10  }
 0x33a   : > { %v5567_v45 = vadd.f32 %v7805_v4, %v5482_v23  ;;  %v3972_v41 = vpop.f32.mrb[27].mxu0  ;;  %v4106_v28 = vadd.f32 %v5561_v3, %v4074_v26  ;;  %v4079_v4 = vunpack.c.h.bf16 %v7857_v30 }
 0x33b   : > { %v5570_v47 = vadd.f32 %v7800_v6, %v3972_v41  ;;  %v4104_v35 = vadd.f32 %v5564_v32, %v4072_v11  ;;  %v4076_v6 = vunpack.c.l.bf16 %v7860_v37 }
 0x33c   : > { %v4107_v44 = vadd.f32 %v5567_v45, %v4075_v31 }
 0x33d   : > { %v4105_v48 = vadd.f32 %v5570_v47, %v4073_v14 }
 0x33e   : > { %v4821_v38 = vpack.c.bf16 %v4107_v44, %v4106_v28 }
 0x33f   : > { %v4816_v21 = vpack.c.bf16 %v4105_v48, %v4104_v35  ;;  %v5485_v7 = vpop.f32.mrb[28].mxu0 }
 0x340   : > { %v5573_v29 = vadd.f32 %v7811_v12, %v5485_v7  ;;  %v3985_v54 = vpop.f32.mrb[29].mxu0  ;;  %4860 = vst [vmem:[%s7851_s9 + $0x68] sm:$0xff] %v4821_v38  }
 0x341   : > { %v5576_v62 = vadd.f32 %v7807_v19, %v3985_v54  ;;  %4859 = vst [vmem:[%s7851_s9 + $0x60] sm:$0xff] %v4816_v21   ;;  %v5486_v39 = vpop.f32.mrb[30].mxu0 }
 0x342   : > { %v5579_v8 = vadd.f32 %v7813_v16, %v5486_v39  ;;  %v3988_v57 = vpop.f32.mrb[31].mxu0  ;;  %v4110_v63 = vadd.f32 %v5573_v29, %v4078_v43 }
 0x343   : > { %v5582_v12 = vadd.f32 %v7809_v2, %v3988_v57  ;;  %v4108_v15 = vadd.f32 %v5576_v62, %v4076_v6 }
 0x344   : > { %v4111_v59 = vadd.f32 %v5579_v8, %v4079_v4 }
 0x345   : > { %v4109_v36 = vadd.f32 %v5582_v12, %v4077_v42 }
 0x346   : > { %v4831_v53 = vpack.c.bf16 %v4111_v59, %v4110_v63 }
 0x347   : > { %v4826_v30 = vpack.c.bf16 %v4109_v36, %v4108_v15 }
 0x348   : > { %4862 = vst [vmem:[%s7851_s9 + $0x78] sm:$0xff] %v4831_v53  }
 0x349   : > { %4861 = vst [vmem:[%s7851_s9 + $0x70] sm:$0xff] %v4826_v30  }
 0x34a PF: > { %s17_s26 = sadd.s32 1, %s5795_s26   ;;  %s8147_s24 = smov %s5791_s25 }
 0x34b   : > { %p14_p5 = scmp.ge.s32.totalorder %s17_s26, 4   ;;  %s8148_s25 = smov %s8150_s27 }
 0x34d   :  { %16 = sbr.rel (!%p14_p5) target bundleno = 2 (0x2), region = 97 }

</bundles_post_ra>
